<compile_context>
chip_gen: v7x
topology: tpu7x:2x2x1
jax: 0.10.0
libtpu: 0.0.40
codegen_flags: <defaults>
</compile_context>

<pallas_src>
import functools
import math

import jax
import jax.numpy as jnp
import numpy as np
from jax.experimental import pallas as pl
from jax.experimental.pallas import tpu as pltpu

# Fits v7x's 64 MiB VMEM with headroom for double buffering; can be raised to
# ~100 MiB on v5e / v6e (128 MiB VMEM) together with larger tiles.
_VMEM_LIMIT_BYTES = 48 * 1024 * 1024


def _pick_tile(n, target, quantum=128):
    """Largest multiple-of-`quantum` divisor of n that is <= target, else n."""
    if n <= target:
        return n
    t = (target // quantum) * quantum
    while t >= quantum:
        if n % t == 0:
            return t
        t -= quantum
    return n


def _rope_cos_sin(pos_col, head_dim, rope_base):
    """pos_col: (rows, 1) int -> cos, sin of shape (rows, head_dim), f32.

    cos/sin are recomputed in-kernel (EUP) from positions; no HBM traffic.
    Only the half-width freqs go through cos/sin, then are duplicated.
    """
    half = head_dim // 2
    idx = jax.lax.broadcasted_iota(jnp.int32, (1, half), 1).astype(jnp.float32)
    inv_freq = jnp.exp(idx * (-2.0 * math.log(rope_base) / head_dim))  # (1, half)
    freqs = pos_col.astype(jnp.float32) * inv_freq                     # (rows, half)
    cos_h = jnp.cos(freqs)
    sin_h = jnp.sin(freqs)
    return (jnp.concatenate([cos_h, cos_h], axis=-1),
            jnp.concatenate([sin_h, sin_h], axis=-1))


# ---------------------------------------------------------------------------
# Kernel 1: fused attention block, grid = (B, q_tiles, kv_groups, kv_tiles)
#   RMSNorm -> q/k/v projections (per kv-head group) -> in-kernel RoPE ->
#   flash-style online-softmax GQA -> per-head accumulated o_proj -> +residual
# ---------------------------------------------------------------------------
def _attn_block_kernel(xq_ref, xkv_ref, posq_ref, poskv_ref, poskr_ref,
                       gamma_ref, wq_ref, wk_ref, wv_ref, wo_ref,
                       out_ref,
                       xnq_scr, q_scr, m_scr, l_scr, acc_scr, y_scr,
                       *, n_rep, head_dim, eps, rope_base, causal):
    g = pl.program_id(2)                    # kv-head group index
    ki = pl.program_id(3)                   # kv tile index (innermost, arbitrary)
    n_groups = pl.num_programs(2)
    n_kv_tiles = pl.num_programs(3)

    half = head_dim // 2
    scaling = head_dim ** -0.5
    cdtype = xq_ref.dtype                   # MXU operand dtype == input dtype
    NEG = -1e30                              # mask value (finite, exp -> 0)

    gamma = gamma_ref[...]                  # (1, H)

    def rmsnorm(x_f32):                     # f32 stats, result back in cdtype
        var = jnp.mean(x_f32 * x_f32, axis=-1, keepdims=True)
        return (x_f32 * jax.lax.rsqrt(var + eps)).astype(cdtype) * gamma

    def rope(t_f32, cos, sin):              # (rows, head_dim) f32
        rot = jnp.concatenate([-t_f32[:, half:], t_f32[:, :half]], axis=-1)
        return t_f32 * cos + rot * sin

    # -- new (batch, q-tile): reset o_proj accumulator, cache RMSNorm(q rows) --
    @pl.when((g == 0) & (ki == 0))
    def _():
        y_scr[...] = jnp.zeros_like(y_scr)
        xnq_scr[...] = rmsnorm(xq_ref[0].astype(jnp.float32))

    # -- new kv group: reset flash stats, project + RoPE this group's q heads --
    @pl.when(ki == 0)
    def _():
        m_scr[...] = jnp.full_like(m_scr, NEG)
        l_scr[...] = jnp.zeros_like(l_scr)
        acc_scr[...] = jnp.zeros_like(acc_scr)
        q_grp = jnp.dot(xnq_scr[...], wq_ref[0],
                        preferred_element_type=jnp.float32)       # (tq, n_rep*dh)
        cos_q, sin_q = _rope_cos_sin(posq_ref[0], head_dim, rope_base)
        for r in range(n_rep):
            qh = rope(q_grp[:, r * head_dim:(r + 1) * head_dim], cos_q, sin_q)
            q_scr[r] = qh.astype(cdtype)

    # -- every step: project K/V for this (group, kv-tile), one flash update --
    xn_kv = rmsnorm(xkv_ref[0].astype(jnp.float32))               # (tk, H)
    k_g = jnp.dot(xn_kv, wk_ref[0], preferred_element_type=jnp.float32)
    v_g = jnp.dot(xn_kv, wv_ref[0],
                  preferred_element_type=jnp.float32).astype(cdtype)
    cos_k, sin_k = _rope_cos_sin(poskv_ref[0], head_dim, rope_base)
    k_g = rope(k_g, cos_k, sin_k).astype(cdtype)                  # (tk, dh)

    if causal:
        # Causal mask generated in-kernel from positions (no (S,S) HBM mask).
        banned = poskr_ref[0] > posq_ref[0]                       # (tq, tk) bool

    for r in range(n_rep):
        # QK^T with rhs contracted on its last dim (no materialized k.T).
        s = jax.lax.dot_general(q_scr[r], k_g, (((1,), (1,)), ((), ())),
                                preferred_element_type=jnp.float32) * scaling
        if causal:
            s = jnp.where(banned, NEG, s)
        m_prev = m_scr[r]                                         # (tq, 1)
        m_new = jnp.maximum(m_prev, jnp.max(s, axis=-1, keepdims=True))
        alpha = jnp.exp(m_prev - m_new)
        p = jnp.exp(s - m_new)
        l_scr[r] = alpha * l_scr[r] + jnp.sum(p, axis=-1, keepdims=True)
        acc_scr[r] = alpha * acc_scr[r] + jnp.dot(
            p.astype(cdtype), v_g, preferred_element_type=jnp.float32)
        m_scr[r] = m_new

    # -- last kv tile of this group: finalize softmax, accumulate o_proj --
    @pl.when(ki == n_kv_tiles - 1)
    def _():
        w_o = wo_ref[0]                                           # (n_rep*dh, H)
        for r in range(n_rep):
            o_h = (acc_scr[r] *
                   pl.reciprocal(l_scr[r], approx=True)).astype(cdtype)
            y_scr[...] += jnp.dot(o_h, w_o[r * head_dim:(r + 1) * head_dim, :],
                                  preferred_element_type=jnp.float32)

    # -- very last step for this (batch, q-tile): add residual, store --
    @pl.when((g == n_groups - 1) & (ki == n_kv_tiles - 1))
    def _():
        out_ref[0] = (xq_ref[0].astype(jnp.float32) + y_scr[...]).astype(out_ref.dtype)


# ---------------------------------------------------------------------------
# Kernel 2: fused MLP block, grid = (B, s_tiles, intermediate_tiles)
#   RMSNorm -> gate/up projection (streamed over I) -> SiLU(gate)*up ->
#   down projection accumulated in f32 -> +residual
# ---------------------------------------------------------------------------
def _mlp_block_kernel(x_ref, gamma_ref, wg_ref, wu_ref, wd_ref, out_ref,
                      xn_scr, y_scr, *, eps):
    ii = pl.program_id(2)
    n_i = pl.num_programs(2)
    cdtype = x_ref.dtype

    @pl.when(ii == 0)
    def _():
        x = x_ref[0].astype(jnp.float32)
        var = jnp.mean(x * x, axis=-1, keepdims=True)
        xn_scr[...] = (x * jax.lax.rsqrt(var + eps)).astype(cdtype) * gamma_ref[...]
        y_scr[...] = jnp.zeros_like(y_scr)

    xn = xn_scr[...]
    gate = jnp.dot(xn, wg_ref[...], preferred_element_type=jnp.float32)  # (ts, ti)
    up = jnp.dot(xn, wu_ref[...], preferred_element_type=jnp.float32)
    hidden = gate * pl.reciprocal(1.0 + jnp.exp(-gate), approx=True) * up
    y_scr[...] += jnp.dot(hidden.astype(cdtype), wd_ref[...],
                          preferred_element_type=jnp.float32)

    @pl.when(ii == n_i - 1)
    def _():
        out_ref[0] = (x_ref[0].astype(jnp.float32) + y_scr[...]).astype(out_ref.dtype)


# ---------------------------------------------------------------------------
# Wrapper: full decoder layer
# ---------------------------------------------------------------------------
def llama_decoder_layer(hidden_states, position_ids, params, *,
                        num_heads, num_kv_heads, eps=1e-6, rope_base=10000.0,
                        causal=True, q_tile=256, kv_tile=256, inter_tile=512):
    B, S, H = hidden_states.shape
    assert num_heads % num_kv_heads == 0 and H % num_heads == 0
    head_dim = H // num_heads
    n_rep = num_heads // num_kv_heads
    inter = params["w_gate"].shape[1]
    dtype = hidden_states.dtype

    # Tile sizes (re-derive / halve for v7x's 64 MiB VMEM if needed).
    tq = _pick_tile(S, q_tile)
    tk = _pick_tile(S, kv_tile)
    ts = _pick_tile(S, q_tile)
    ti = _pick_tile(inter, inter_tile)
    nq, nk, ns, ni = S // tq, S // tk, S // ts, inter // ti

    pos_col = position_ids.reshape(B, S, 1).astype(jnp.int32)  # seq on sublanes
    pos_row = position_ids.reshape(B, 1, S).astype(jnp.int32)  # seq on lanes (mask)

    g1 = params["input_norm_w"].reshape(1, H).astype(dtype)
    g2 = params["post_norm_w"].reshape(1, H).astype(dtype)

    # Group-major weight layouts so each grid step DMAs only its kv-group
    # slice (block shape == full dims of the reshaped arrays -> always legal).
    wq_g = params["w_q"].astype(dtype).reshape(
        H, num_kv_heads, n_rep * head_dim).transpose(1, 0, 2)   # (nkv, H, n_rep*dh)
    wk_g = params["w_k"].astype(dtype).reshape(
        H, num_kv_heads, head_dim).transpose(1, 0, 2)           # (nkv, H, dh)
    wv_g = params["w_v"].astype(dtype).reshape(
        H, num_kv_heads, head_dim).transpose(1, 0, 2)           # (nkv, H, dh)
    wo_g = params["w_o"].astype(dtype).reshape(
        num_kv_heads, n_rep * head_dim, H)                      # (nkv, n_rep*dh, H)

    attn_kernel = functools.partial(
        _attn_block_kernel, n_rep=n_rep, head_dim=head_dim, eps=eps,
        rope_base=rope_base, causal=causal)

    h1 = pl.pallas_call(
        attn_kernel,
        out_shape=jax.ShapeDtypeStruct((B, S, H), dtype),
        grid=(B, nq, num_kv_heads, nk),
        in_specs=[
            pl.BlockSpec((1, tq, H), lambda b, qi, g, ki: (b, qi, 0)),   # x (q rows)
            pl.BlockSpec((1, tk, H), lambda b, qi, g, ki: (b, ki, 0)),   # x (kv rows)
            pl.BlockSpec((1, tq, 1), lambda b, qi, g, ki: (b, qi, 0)),   # q positions
            pl.BlockSpec((1, tk, 1), lambda b, qi, g, ki: (b, ki, 0)),   # kv positions
            pl.BlockSpec((1, 1, tk), lambda b, qi, g, ki: (b, 0, ki)),   # kv pos (row)
            pl.BlockSpec((1, H), lambda b, qi, g, ki: (0, 0),
                         pipeline_mode=pl.Buffered(1)),                  # input norm w
            pl.BlockSpec((1, H, n_rep * head_dim),
                         lambda b, qi, g, ki: (g, 0, 0)),                # w_q group
            pl.BlockSpec((1, H, head_dim),
                         lambda b, qi, g, ki: (g, 0, 0)),                # w_k group
            pl.BlockSpec((1, H, head_dim),
                         lambda b, qi, g, ki: (g, 0, 0)),                # w_v group
            pl.BlockSpec((1, n_rep * head_dim, H),
                         lambda b, qi, g, ki: (g, 0, 0)),                # w_o group
        ],
        out_specs=pl.BlockSpec((1, tq, H), lambda b, qi, g, ki: (b, qi, 0)),
        scratch_shapes=[
            pltpu.VMEM((tq, H), dtype),                       # cached RMSNorm(q rows)
            pltpu.VMEM((n_rep, tq, head_dim), dtype),         # q after RoPE
            pltpu.VMEM((n_rep, tq, 1), jnp.float32),          # m (flash)
            pltpu.VMEM((n_rep, tq, 1), jnp.float32),          # l (flash)
            pltpu.VMEM((n_rep, tq, head_dim), jnp.float32),   # acc (flash)
            pltpu.VMEM((tq, H), jnp.float32),                 # o_proj accumulator
        ],
        compiler_params=pltpu.CompilerParams(
            dimension_semantics=("parallel", "parallel", "arbitrary", "arbitrary"),
            vmem_limit_bytes=_VMEM_LIMIT_BYTES),
    )(hidden_states, hidden_states, pos_col, pos_col, pos_row,
      g1, wq_g, wk_g, wv_g, wo_g)

    mlp_kernel = functools.partial(_mlp_block_kernel, eps=eps)
    out = pl.pallas_call(
        mlp_kernel,
        out_shape=jax.ShapeDtypeStruct((B, S, H), dtype),
        grid=(B, ns, ni),
        in_specs=[
            pl.BlockSpec((1, ts, H), lambda b, si, ii: (b, si, 0)),      # hidden
            pl.BlockSpec((1, H), lambda b, si, ii: (0, 0),
                         pipeline_mode=pl.Buffered(1)),                  # post norm w
            pl.BlockSpec((H, ti), lambda b, si, ii: (0, ii)),            # w_gate tile
            pl.BlockSpec((H, ti), lambda b, si, ii: (0, ii)),            # w_up tile
            pl.BlockSpec((ti, H), lambda b, si, ii: (ii, 0)),            # w_down tile
        ],
        out_specs=pl.BlockSpec((1, ts, H), lambda b, si, ii: (b, si, 0)),
        scratch_shapes=[
            pltpu.VMEM((ts, H), dtype),                       # cached RMSNorm(x)
            pltpu.VMEM((ts, H), jnp.float32),                 # down_proj accumulator
        ],
        compiler_params=pltpu.CompilerParams(
            dimension_semantics=("parallel", "parallel", "arbitrary"),
            vmem_limit_bytes=_VMEM_LIMIT_BYTES),
    )(h1, g2, params["w_gate"].astype(dtype), params["w_up"].astype(dtype),
      params["w_down"].astype(dtype))
    return out


# ---------------------------------------------------------------------------
# Pure numpy reference mirroring the PyTorch module math (causal mask).
# ---------------------------------------------------------------------------
def _reference(hidden, position_ids, params, *, num_heads, num_kv_heads,
               eps, base, causal=True):
    x = np.asarray(hidden, np.float32)
    B, S, H = x.shape
    dh = H // num_heads
    n_rep = num_heads // num_kv_heads

    def rmsnorm(h, w):
        var = np.mean(h * h, axis=-1, keepdims=True)
        return np.asarray(w, np.float32) * (h / np.sqrt(var + eps))

    xn = rmsnorm(x, params["input_norm_w"])
    q = (xn @ params["w_q"]).reshape(B, S, num_heads, dh).transpose(0, 2, 1, 3)
    k = (xn @ params["w_k"]).reshape(B, S, num_kv_heads, dh).transpose(0, 2, 1, 3)
    v = (xn @ params["w_v"]).reshape(B, S, num_kv_heads, dh).transpose(0, 2, 1, 3)

    pos = np.asarray(position_ids, np.float32)
    inv_freq = 1.0 / base ** (np.arange(0, dh, 2, dtype=np.float32) / dh)
    freqs = pos[..., None] * inv_freq
    emb = np.concatenate([freqs, freqs], axis=-1)
    cos = np.cos(emb)[:, None]
    sin = np.sin(emb)[:, None]

    def rot_half(t):
        return np.concatenate([-t[..., dh // 2:], t[..., :dh // 2]], axis=-1)

    qe = q * cos + rot_half(q) * sin
    ke = k * cos + rot_half(k) * sin
    ke = np.repeat(ke, n_rep, axis=1)
    ve = np.repeat(v, n_rep, axis=1)

    scores = (qe @ ke.transpose(0, 1, 3, 2)) * dh ** -0.5
    if causal:
        p_ids = np.asarray(position_ids)
        banned = p_ids[:, None, :] > p_ids[:, :, None]            # (B, Sq, Sk)
        scores = np.where(banned[:, None], -1e30, scores)
    scores = scores - scores.max(-1, keepdims=True)
    p = np.exp(scores)
    p = p / p.sum(-1, keepdims=True)
    ao = (p @ ve).transpose(0, 2, 1, 3).reshape(B, S, -1)
    h1 = x + ao @ params["w_o"]

    xn2 = rmsnorm(h1, params["post_norm_w"])
    gate = xn2 @ params["w_gate"]
    up = xn2 @ params["w_up"]
    mlp = ((gate / (1.0 + np.exp(-gate))) * up) @ params["w_down"]
    return h1 + mlp


if __name__ == "__main__":
    # Small config consistent with the module structure.
    hidden_size = 64
    num_heads = 4
    num_kv_heads = 2
    intermediate = 128
    head_dim = hidden_size // num_heads
    eps = 1e-6
    rope_base = 10000.0
    B, S = 2, 8

    key = jax.random.PRNGKey(0)
    ks = jax.random.split(key, 10)
    init = 0.02
    params = {
        "input_norm_w": 1.0 + 0.1 * jax.random.normal(ks[0], (hidden_size,), jnp.float32),
        "post_norm_w": 1.0 + 0.1 * jax.random.normal(ks[1], (hidden_size,), jnp.float32),
        "w_q": init * jax.random.normal(ks[2], (hidden_size, num_heads * head_dim), jnp.float32),
        "w_k": init * jax.random.normal(ks[3], (hidden_size, num_kv_heads * head_dim), jnp.float32),
        "w_v": init * jax.random.normal(ks[4], (hidden_size, num_kv_heads * head_dim), jnp.float32),
        "w_o": init * jax.random.normal(ks[5], (num_heads * head_dim, hidden_size), jnp.float32),
        "w_gate": init * jax.random.normal(ks[6], (hidden_size, intermediate), jnp.float32),
        "w_up": init * jax.random.normal(ks[7], (hidden_size, intermediate), jnp.float32),
        "w_down": init * jax.random.normal(ks[8], (intermediate, hidden_size), jnp.float32),
    }
    hidden = jax.random.normal(ks[9], (B, S, hidden_size), jnp.float32)
    position_ids = jnp.broadcast_to(jnp.arange(S, dtype=jnp.int32), (B, S))

    out = llama_decoder_layer(hidden, position_ids, params,
                              num_heads=num_heads, num_kv_heads=num_kv_heads,
                              eps=eps, rope_base=rope_base, causal=True)
    out = jax.block_until_ready(out)

    ref = _reference(np.asarray(hidden), np.asarray(position_ids),
                     {k: np.asarray(v, np.float32) for k, v in params.items()},
                     num_heads=num_heads, num_kv_heads=num_kv_heads,
                     eps=eps, base=rope_base, causal=True)

    np.testing.assert_allclose(np.asarray(out), ref, rtol=2e-3, atol=2e-3)
    print("KERNEL_OK")
</pallas_src>

<mosaic_0001>
module attributes {stable_mosaic.version = 11 : i64} {
  func.func @_attn_block_kernel(%arg0: i32, %arg1: i32, %arg2: i32, %arg3: i32, %arg4: memref<1x8x64xf32, #tpu.memory_space<vmem>>, %arg5: memref<1x8x64xf32, #tpu.memory_space<vmem>>, %arg6: memref<1x8x1xi32, #tpu.memory_space<vmem>>, %arg7: memref<1x8x1xi32, #tpu.memory_space<vmem>>, %arg8: memref<1x1x8xi32, #tpu.memory_space<vmem>>, %arg9: memref<1x64xf32, #tpu.memory_space<vmem>>, %arg10: memref<1x64x32xf32, #tpu.memory_space<vmem>>, %arg11: memref<1x64x16xf32, #tpu.memory_space<vmem>>, %arg12: memref<1x64x16xf32, #tpu.memory_space<vmem>>, %arg13: memref<1x32x64xf32, #tpu.memory_space<vmem>>, %arg14: memref<1x8x64xf32, #tpu.memory_space<vmem>>, %arg15: memref<8x64xf32, #tpu.memory_space<vmem>>, %arg16: memref<2x8x16xf32, #tpu.memory_space<vmem>>, %arg17: memref<2x8x1xf32, #tpu.memory_space<vmem>>, %arg18: memref<2x8x1xf32, #tpu.memory_space<vmem>>, %arg19: memref<2x8x16xf32, #tpu.memory_space<vmem>>, %arg20: memref<8x64xf32, #tpu.memory_space<vmem>>) attributes {dimension_semantics = [#tpu.dimension_semantics<parallel>, #tpu.dimension_semantics<parallel>, #tpu.dimension_semantics<arbitrary>, #tpu.dimension_semantics<arbitrary>], iteration_bounds = array<i64: 2, 1, 2, 1>, scalar_prefetch = 0 : i64, scratch_operands = 6 : i64, tpu.core_type = #tpu.core_type<tc>, window_params = [{transform_indices = @transform_0, window_bounds = array<i64: 1, 8, 64>}, {transform_indices = @transform_1, window_bounds = array<i64: 1, 8, 64>}, {transform_indices = @transform_2, window_bounds = array<i64: 1, 8, 1>}, {transform_indices = @transform_3, window_bounds = array<i64: 1, 8, 1>}, {transform_indices = @transform_4, window_bounds = array<i64: 1, 1, 8>}, {pipeline_mode = #tpu.pipeline_mode<synchronous>, transform_indices = @transform_5, window_bounds = array<i64: 1, 64>}, {transform_indices = @transform_6, window_bounds = array<i64: 1, 64, 32>}, {transform_indices = @transform_7, window_bounds = array<i64: 1, 64, 16>}, {transform_indices = @transform_8, window_bounds = array<i64: 1, 64, 16>}, {transform_indices = @transform_9, window_bounds = array<i64: 1, 32, 64>}, {transform_indices = @transform_10, window_bounds = array<i64: 1, 8, 64>}]} {
    %c0 = arith.constant 0 : index
    %c0_0 = arith.constant 0 : index
    %0 = vector.load %arg9[%c0, %c0_0] : memref<1x64xf32, #tpu.memory_space<vmem>>, vector<1x64xf32>
    %c0_i32 = arith.constant 0 : i32
    %1 = arith.cmpi eq, %arg2, %c0_i32 : i32
    %c0_i32_1 = arith.constant 0 : i32
    %2 = arith.cmpi eq, %arg3, %c0_i32_1 : i32
    %3 = arith.andi %1, %2 : i1
    %4 = arith.extui %3 : i1 to i32
    %c0_i32_2 = arith.constant 0 : i32
    %5 = arith.cmpi ne, %4, %c0_i32_2 : i32
    scf.if %5 {
      %cst_86 = arith.constant 0.000000e+00 : f32
      %143 = vector.broadcast %cst_86 : f32 to vector<8x64xf32>
      %c0_87 = arith.constant 0 : index
      %c0_88 = arith.constant 0 : index
      %144 = vector.load %arg20[%c0_87, %c0_88] : memref<8x64xf32, #tpu.memory_space<vmem>>, vector<8x64xf32>
      tpu.vector_store %arg20[%c0_87, %c0_88], %143 {strides = array<i32>} : memref<8x64xf32, #tpu.memory_space<vmem>>, vector<8x64xf32>,
      %c0_89 = arith.constant 0 : index
      %c0_90 = arith.constant 0 : index
      %c0_91 = arith.constant 0 : index
      %145 = vector.load %arg4[%c0_89, %c0_90, %c0_91] : memref<1x8x64xf32, #tpu.memory_space<vmem>>, vector<1x8x64xf32>
      %146 = vector.shape_cast %145 : vector<1x8x64xf32> to vector<8x64xf32>
      %147 = arith.mulf %146, %146 : vector<8x64xf32>
      %cst_92 = arith.constant dense<0.000000e+00> : vector<8xf32>
      %148 = vector.multi_reduction <add>, %147, %cst_92 [1] : vector<8x64xf32> to vector<8xf32>
      %149 = vector.shape_cast %148 : vector<8xf32> to vector<8x1xf32>
      %cst_93 = arith.constant 6.400000e+01 : f32
      %150 = vector.broadcast %cst_93 : f32 to vector<8x1xf32>
      %151 = arith.divf %149, %150 : vector<8x1xf32>
      %cst_94 = arith.constant 9.99999997E-7 : f32
      %152 = vector.broadcast %cst_94 : f32 to vector<8x1xf32>
      %153 = arith.addf %151, %152 : vector<8x1xf32>
      %154 = math.rsqrt %153 : vector<8x1xf32>
      %155 = vector.broadcast %154 : vector<8x1xf32> to vector<8x64xf32>
      %156 = arith.mulf %146, %155 : vector<8x64xf32>
      %157 = vector.broadcast %0 : vector<1x64xf32> to vector<8x64xf32>
      %158 = arith.mulf %156, %157 : vector<8x64xf32>
      %c0_95 = arith.constant 0 : index
      %c0_96 = arith.constant 0 : index
      %159 = vector.load %arg15[%c0_95, %c0_96] : memref<8x64xf32, #tpu.memory_space<vmem>>, vector<8x64xf32>
      tpu.vector_store %arg15[%c0_95, %c0_96], %158 {strides = array<i32>} : memref<8x64xf32, #tpu.memory_space<vmem>>, vector<8x64xf32>,
    } else {
    }
    %c0_i32_3 = arith.constant 0 : i32
    %6 = arith.cmpi eq, %arg3, %c0_i32_3 : i32
    %7 = arith.extui %6 : i1 to i32
    %c0_i32_4 = arith.constant 0 : i32
    %8 = arith.cmpi ne, %7, %c0_i32_4 : i32
    scf.if %8 {
      %cst_86 = arith.constant -1.000000e+30 : f32
      %143 = vector.broadcast %cst_86 : f32 to vector<2x8x1xf32>
      %c0_87 = arith.constant 0 : index
      %c0_88 = arith.constant 0 : index
      %c0_89 = arith.constant 0 : index
      %144 = vector.load %arg17[%c0_87, %c0_88, %c0_89] : memref<2x8x1xf32, #tpu.memory_space<vmem>>, vector<2x8x1xf32>
      tpu.vector_store %arg17[%c0_87, %c0_88, %c0_89], %143 {strides = array<i32>} : memref<2x8x1xf32, #tpu.memory_space<vmem>>, vector<2x8x1xf32>,
      %cst_90 = arith.constant 0.000000e+00 : f32
      %145 = vector.broadcast %cst_90 : f32 to vector<2x8x1xf32>
      %c0_91 = arith.constant 0 : index
      %c0_92 = arith.constant 0 : index
      %c0_93 = arith.constant 0 : index
      %146 = vector.load %arg18[%c0_91, %c0_92, %c0_93] : memref<2x8x1xf32, #tpu.memory_space<vmem>>, vector<2x8x1xf32>
      tpu.vector_store %arg18[%c0_91, %c0_92, %c0_93], %145 {strides = array<i32>} : memref<2x8x1xf32, #tpu.memory_space<vmem>>, vector<2x8x1xf32>,
      %cst_94 = arith.constant 0.000000e+00 : f32
      %147 = vector.broadcast %cst_94 : f32 to vector<2x8x16xf32>
      %c0_95 = arith.constant 0 : index
      %c0_96 = arith.constant 0 : index
      %c0_97 = arith.constant 0 : index
      %148 = vector.load %arg19[%c0_95, %c0_96, %c0_97] : memref<2x8x16xf32, #tpu.memory_space<vmem>>, vector<2x8x16xf32>
      tpu.vector_store %arg19[%c0_95, %c0_96, %c0_97], %147 {strides = array<i32>} : memref<2x8x16xf32, #tpu.memory_space<vmem>>, vector<2x8x16xf32>,
      %c0_98 = arith.constant 0 : index
      %c0_99 = arith.constant 0 : index
      %149 = vector.load %arg15[%c0_98, %c0_99] : memref<8x64xf32, #tpu.memory_space<vmem>>, vector<8x64xf32>
      %c0_100 = arith.constant 0 : index
      %c0_101 = arith.constant 0 : index
      %c0_102 = arith.constant 0 : index
      %150 = vector.load %arg10[%c0_100, %c0_101, %c0_102] : memref<1x64x32xf32, #tpu.memory_space<vmem>>, vector<1x64x32xf32>
      %151 = vector.shape_cast %150 : vector<1x64x32xf32> to vector<64x32xf32>
      %cst_103 = arith.constant dense<0.000000e+00> : vector<8x32xf32>
      %152 = tpu.matmul %149, %151, %cst_103 {dimension_numbers = #tpu.dot_dimension_numbers<[1], [0], [0], [1], [0, 0, 1, 1], [], []>} : vector<8x64xf32>, vector<64x32xf32>, vector<8x32xf32> -> vector<8x32xf32>
      %c0_104 = arith.constant 0 : index
      %c0_105 = arith.constant 0 : index
      %c0_106 = arith.constant 0 : index
      %153 = vector.load %arg6[%c0_104, %c0_105, %c0_106] : memref<1x8x1xi32, #tpu.memory_space<vmem>>, vector<1x8x1xi32>
      %154 = vector.shape_cast %153 : vector<1x8x1xi32> to vector<8x1xi32>
      %155 = tpu.iota {dimensions = array<i32: 1>} : vector<1x8xi32>
      %156 = arith.sitofp %155 : vector<1x8xi32> to vector<1x8xf32>
      %cst_107 = arith.constant -1.15129256 : f32
      %157 = vector.broadcast %cst_107 : f32 to vector<1x8xf32>
      %158 = arith.mulf %156, %157 : vector<1x8xf32>
      %159 = math.exp %158 : vector<1x8xf32>
      %160 = arith.sitofp %154 : vector<8x1xi32> to vector<8x1xf32>
      %161 = vector.broadcast %160 : vector<8x1xf32> to vector<8x8xf32>
      %162 = vector.broadcast %159 : vector<1x8xf32> to vector<8x8xf32>
      %163 = arith.mulf %161, %162 : vector<8x8xf32>
      %164 = math.cos %163 : vector<8x8xf32>
      %165 = math.sin %163 : vector<8x8xf32>
      %166 = tpu.concatenate %164, %164 in 1 : vector<8x8xf32>, vector<8x8xf32> -> vector<8x16xf32>
      %167 = tpu.concatenate %165, %165 in 1 : vector<8x8xf32>, vector<8x8xf32> -> vector<8x16xf32>
      %168 = vector.extract_strided_slice %152 {offsets = [0, 0], sizes = [8, 16], strides = [1, 1]} : vector<8x32xf32> to vector<8x16xf32>
      %169 = vector.extract_strided_slice %168 {offsets = [0, 8], sizes = [8, 8], strides = [1, 1]} : vector<8x16xf32> to vector<8x8xf32>
      %cst_108 = arith.constant 0.000000e+00 : f32
      %170 = vector.broadcast %cst_108 : f32 to vector<8x8xf32>
      %171 = arith.subf %170, %169 : vector<8x8xf32>
      %172 = vector.extract_strided_slice %168 {offsets = [0, 0], sizes = [8, 8], strides = [1, 1]} : vector<8x16xf32> to vector<8x8xf32>
      %173 = tpu.concatenate %171, %172 in 1 : vector<8x8xf32>, vector<8x8xf32> -> vector<8x16xf32>
      %174 = arith.mulf %168, %166 : vector<8x16xf32>
      %175 = arith.mulf %173, %167 : vector<8x16xf32>
      %176 = arith.addf %174, %175 : vector<8x16xf32>
      %c0_109 = arith.constant 0 : index
      %c0_110 = arith.constant 0 : index
      %c0_111 = arith.constant 0 : index
      %177 = vector.load %arg16[%c0_109, %c0_110, %c0_111] : memref<2x8x16xf32, #tpu.memory_space<vmem>>, vector<1x8x16xf32>
      %178 = vector.shape_cast %177 : vector<1x8x16xf32> to vector<8x16xf32>
      %179 = vector.shape_cast %176 : vector<8x16xf32> to vector<1x8x16xf32>
      tpu.vector_store %arg16[%c0_109, %c0_110, %c0_111], %179 {strides = array<i32>} : memref<2x8x16xf32, #tpu.memory_space<vmem>>, vector<1x8x16xf32>,
      %180 = vector.extract_strided_slice %152 {offsets = [0, 16], sizes = [8, 16], strides = [1, 1]} : vector<8x32xf32> to vector<8x16xf32>
      %181 = vector.extract_strided_slice %180 {offsets = [0, 8], sizes = [8, 8], strides = [1, 1]} : vector<8x16xf32> to vector<8x8xf32>
      %cst_112 = arith.constant 0.000000e+00 : f32
      %182 = vector.broadcast %cst_112 : f32 to vector<8x8xf32>
      %183 = arith.subf %182, %181 : vector<8x8xf32>
      %184 = vector.extract_strided_slice %180 {offsets = [0, 0], sizes = [8, 8], strides = [1, 1]} : vector<8x16xf32> to vector<8x8xf32>
      %185 = tpu.concatenate %183, %184 in 1 : vector<8x8xf32>, vector<8x8xf32> -> vector<8x16xf32>
      %186 = arith.mulf %180, %166 : vector<8x16xf32>
      %187 = arith.mulf %185, %167 : vector<8x16xf32>
      %188 = arith.addf %186, %187 : vector<8x16xf32>
      %c1_113 = arith.constant 1 : index
      %c0_114 = arith.constant 0 : index
      %c0_115 = arith.constant 0 : index
      %189 = vector.load %arg16[%c1_113, %c0_114, %c0_115] : memref<2x8x16xf32, #tpu.memory_space<vmem>>, vector<1x8x16xf32>
      %190 = vector.shape_cast %189 : vector<1x8x16xf32> to vector<8x16xf32>
      %191 = vector.shape_cast %188 : vector<8x16xf32> to vector<1x8x16xf32>
      tpu.vector_store %arg16[%c1_113, %c0_114, %c0_115], %191 {strides = array<i32>} : memref<2x8x16xf32, #tpu.memory_space<vmem>>, vector<1x8x16xf32>,
    } else {
    }
    %c0_5 = arith.constant 0 : index
    %c0_6 = arith.constant 0 : index
    %c0_7 = arith.constant 0 : index
    %9 = vector.load %arg5[%c0_5, %c0_6, %c0_7] : memref<1x8x64xf32, #tpu.memory_space<vmem>>, vector<1x8x64xf32>
    %10 = vector.shape_cast %9 : vector<1x8x64xf32> to vector<8x64xf32>
    %11 = arith.mulf %10, %10 : vector<8x64xf32>
    %cst = arith.constant dense<0.000000e+00> : vector<8xf32>
    %12 = vector.multi_reduction <add>, %11, %cst [1] : vector<8x64xf32> to vector<8xf32>
    %13 = vector.shape_cast %12 : vector<8xf32> to vector<8x1xf32>
    %cst_8 = arith.constant 6.400000e+01 : f32
    %14 = vector.broadcast %cst_8 : f32 to vector<8x1xf32>
    %15 = arith.divf %13, %14 : vector<8x1xf32>
    %cst_9 = arith.constant 9.99999997E-7 : f32
    %16 = vector.broadcast %cst_9 : f32 to vector<8x1xf32>
    %17 = arith.addf %15, %16 : vector<8x1xf32>
    %18 = math.rsqrt %17 : vector<8x1xf32>
    %19 = vector.broadcast %18 : vector<8x1xf32> to vector<8x64xf32>
    %20 = arith.mulf %10, %19 : vector<8x64xf32>
    %21 = vector.broadcast %0 : vector<1x64xf32> to vector<8x64xf32>
    %22 = arith.mulf %20, %21 : vector<8x64xf32>
    %c0_10 = arith.constant 0 : index
    %c0_11 = arith.constant 0 : index
    %c0_12 = arith.constant 0 : index
    %23 = vector.load %arg11[%c0_10, %c0_11, %c0_12] : memref<1x64x16xf32, #tpu.memory_space<vmem>>, vector<1x64x16xf32>
    %24 = vector.shape_cast %23 : vector<1x64x16xf32> to vector<64x16xf32>
    %cst_13 = arith.constant dense<0.000000e+00> : vector<8x16xf32>
    %25 = tpu.matmul %22, %24, %cst_13 {dimension_numbers = #tpu.dot_dimension_numbers<[1], [0], [0], [1], [0, 0, 1, 1], [], []>} : vector<8x64xf32>, vector<64x16xf32>, vector<8x16xf32> -> vector<8x16xf32>
    %c0_14 = arith.constant 0 : index
    %c0_15 = arith.constant 0 : index
    %c0_16 = arith.constant 0 : index
    %26 = vector.load %arg12[%c0_14, %c0_15, %c0_16] : memref<1x64x16xf32, #tpu.memory_space<vmem>>, vector<1x64x16xf32>
    %27 = vector.shape_cast %26 : vector<1x64x16xf32> to vector<64x16xf32>
    %cst_17 = arith.constant dense<0.000000e+00> : vector<8x16xf32>
    %28 = tpu.matmul %22, %27, %cst_17 {dimension_numbers = #tpu.dot_dimension_numbers<[1], [0], [0], [1], [0, 0, 1, 1], [], []>} : vector<8x64xf32>, vector<64x16xf32>, vector<8x16xf32> -> vector<8x16xf32>
    %c0_18 = arith.constant 0 : index
    %c0_19 = arith.constant 0 : index
    %c0_20 = arith.constant 0 : index
    %29 = vector.load %arg7[%c0_18, %c0_19, %c0_20] : memref<1x8x1xi32, #tpu.memory_space<vmem>>, vector<1x8x1xi32>
    %30 = vector.shape_cast %29 : vector<1x8x1xi32> to vector<8x1xi32>
    %31 = tpu.iota {dimensions = array<i32: 1>} : vector<1x8xi32>
    %32 = arith.sitofp %31 : vector<1x8xi32> to vector<1x8xf32>
    %cst_21 = arith.constant -1.15129256 : f32
    %33 = vector.broadcast %cst_21 : f32 to vector<1x8xf32>
    %34 = arith.mulf %32, %33 : vector<1x8xf32>
    %35 = math.exp %34 : vector<1x8xf32>
    %36 = arith.sitofp %30 : vector<8x1xi32> to vector<8x1xf32>
    %37 = vector.broadcast %36 : vector<8x1xf32> to vector<8x8xf32>
    %38 = vector.broadcast %35 : vector<1x8xf32> to vector<8x8xf32>
    %39 = arith.mulf %37, %38 : vector<8x8xf32>
    %40 = math.cos %39 : vector<8x8xf32>
    %41 = math.sin %39 : vector<8x8xf32>
    %42 = tpu.concatenate %40, %40 in 1 : vector<8x8xf32>, vector<8x8xf32> -> vector<8x16xf32>
    %43 = tpu.concatenate %41, %41 in 1 : vector<8x8xf32>, vector<8x8xf32> -> vector<8x16xf32>
    %44 = vector.extract_strided_slice %25 {offsets = [0, 8], sizes = [8, 8], strides = [1, 1]} : vector<8x16xf32> to vector<8x8xf32>
    %cst_22 = arith.constant 0.000000e+00 : f32
    %45 = vector.broadcast %cst_22 : f32 to vector<8x8xf32>
    %46 = arith.subf %45, %44 : vector<8x8xf32>
    %47 = vector.extract_strided_slice %25 {offsets = [0, 0], sizes = [8, 8], strides = [1, 1]} : vector<8x16xf32> to vector<8x8xf32>
    %48 = tpu.concatenate %46, %47 in 1 : vector<8x8xf32>, vector<8x8xf32> -> vector<8x16xf32>
    %49 = arith.mulf %25, %42 : vector<8x16xf32>
    %50 = arith.mulf %48, %43 : vector<8x16xf32>
    %51 = arith.addf %49, %50 : vector<8x16xf32>
    %c0_23 = arith.constant 0 : index
    %c0_24 = arith.constant 0 : index
    %c0_25 = arith.constant 0 : index
    %52 = vector.load %arg8[%c0_23, %c0_24, %c0_25] : memref<1x1x8xi32, #tpu.memory_space<vmem>>, vector<1x1x8xi32>
    %53 = vector.shape_cast %52 : vector<1x1x8xi32> to vector<1x8xi32>
    %c0_26 = arith.constant 0 : index
    %c0_27 = arith.constant 0 : index
    %c0_28 = arith.constant 0 : index
    %54 = vector.load %arg6[%c0_26, %c0_27, %c0_28] : memref<1x8x1xi32, #tpu.memory_space<vmem>>, vector<1x8x1xi32>
    %55 = vector.shape_cast %54 : vector<1x8x1xi32> to vector<8x1xi32>
    %56 = vector.broadcast %53 : vector<1x8xi32> to vector<8x8xi32>
    %57 = vector.broadcast %55 : vector<8x1xi32> to vector<8x8xi32>
    %58 = arith.cmpi sgt, %56, %57 : vector<8x8xi32>
    %c0_29 = arith.constant 0 : index
    %c0_30 = arith.constant 0 : index
    %c0_31 = arith.constant 0 : index
    %59 = vector.load %arg16[%c0_29, %c0_30, %c0_31] : memref<2x8x16xf32, #tpu.memory_space<vmem>>, vector<1x8x16xf32>
    %60 = vector.shape_cast %59 : vector<1x8x16xf32> to vector<8x16xf32>
    %cst_32 = arith.constant dense<0.000000e+00> : vector<8x8xf32>
    %61 = tpu.matmul %60, %51, %cst_32 {dimension_numbers = #tpu.dot_dimension_numbers<[1], [1], [0], [0], [0, 0, 1, 0], [], []>} : vector<8x16xf32>, vector<8x16xf32>, vector<8x8xf32> -> vector<8x8xf32>
    %cst_33 = arith.constant 2.500000e-01 : f32
    %62 = vector.broadcast %cst_33 : f32 to vector<8x8xf32>
    %63 = arith.mulf %61, %62 : vector<8x8xf32>
    %cst_34 = arith.constant -1.000000e+30 : f32
    %64 = vector.broadcast %cst_34 : f32 to vector<8x8xf32>
    %65 = arith.select %58, %64, %63 : vector<8x8xi1>, vector<8x8xf32>
    %c0_35 = arith.constant 0 : index
    %c0_36 = arith.constant 0 : index
    %c0_37 = arith.constant 0 : index
    %66 = vector.load %arg17[%c0_35, %c0_36, %c0_37] : memref<2x8x1xf32, #tpu.memory_space<vmem>>, vector<1x8x1xf32>
    %67 = vector.shape_cast %66 : vector<1x8x1xf32> to vector<8x1xf32>
    %cst_38 = arith.constant dense<0xFF800000> : vector<8xf32>
    %68 = vector.multi_reduction <maximumf>, %65, %cst_38 [1] : vector<8x8xf32> to vector<8xf32>
    %69 = vector.shape_cast %68 : vector<8xf32> to vector<8x1xf32>
    %70 = arith.maximumf %67, %69 : vector<8x1xf32>
    %71 = arith.subf %67, %70 : vector<8x1xf32>
    %72 = math.exp %71 : vector<8x1xf32>
    %73 = vector.broadcast %70 : vector<8x1xf32> to vector<8x8xf32>
    %74 = arith.subf %65, %73 : vector<8x8xf32>
    %75 = math.exp %74 : vector<8x8xf32>
    %c0_39 = arith.constant 0 : index
    %c0_40 = arith.constant 0 : index
    %c0_41 = arith.constant 0 : index
    %76 = vector.load %arg18[%c0_39, %c0_40, %c0_41] : memref<2x8x1xf32, #tpu.memory_space<vmem>>, vector<1x8x1xf32>
    %77 = vector.shape_cast %76 : vector<1x8x1xf32> to vector<8x1xf32>
    %78 = arith.mulf %72, %77 : vector<8x1xf32>
    %cst_42 = arith.constant dense<0.000000e+00> : vector<8xf32>
    %79 = vector.multi_reduction <add>, %75, %cst_42 [1] : vector<8x8xf32> to vector<8xf32>
    %80 = vector.shape_cast %79 : vector<8xf32> to vector<8x1xf32>
    %81 = arith.addf %78, %80 : vector<8x1xf32>
    %c0_43 = arith.constant 0 : index
    %c0_44 = arith.constant 0 : index
    %c0_45 = arith.constant 0 : index
    %82 = vector.load %arg18[%c0_43, %c0_44, %c0_45] : memref<2x8x1xf32, #tpu.memory_space<vmem>>, vector<1x8x1xf32>
    %83 = vector.shape_cast %82 : vector<1x8x1xf32> to vector<8x1xf32>
    %84 = vector.shape_cast %81 : vector<8x1xf32> to vector<1x8x1xf32>
    tpu.vector_store %arg18[%c0_43, %c0_44, %c0_45], %84 {strides = array<i32>} : memref<2x8x1xf32, #tpu.memory_space<vmem>>, vector<1x8x1xf32>,
    %c0_46 = arith.constant 0 : index
    %c0_47 = arith.constant 0 : index
    %c0_48 = arith.constant 0 : index
    %85 = vector.load %arg19[%c0_46, %c0_47, %c0_48] : memref<2x8x16xf32, #tpu.memory_space<vmem>>, vector<1x8x16xf32>
    %86 = vector.shape_cast %85 : vector<1x8x16xf32> to vector<8x16xf32>
    %87 = vector.broadcast %72 : vector<8x1xf32> to vector<8x16xf32>
    %88 = arith.mulf %87, %86 : vector<8x16xf32>
    %cst_49 = arith.constant dense<0.000000e+00> : vector<8x16xf32>
    %89 = tpu.matmul %75, %28, %cst_49 {dimension_numbers = #tpu.dot_dimension_numbers<[1], [0], [0], [1], [0, 0, 1, 1], [], []>} : vector<8x8xf32>, vector<8x16xf32>, vector<8x16xf32> -> vector<8x16xf32>
    %90 = arith.addf %88, %89 : vector<8x16xf32>
    %c0_50 = arith.constant 0 : index
    %c0_51 = arith.constant 0 : index
    %c0_52 = arith.constant 0 : index
    %91 = vector.load %arg19[%c0_50, %c0_51, %c0_52] : memref<2x8x16xf32, #tpu.memory_space<vmem>>, vector<1x8x16xf32>
    %92 = vector.shape_cast %91 : vector<1x8x16xf32> to vector<8x16xf32>
    %93 = vector.shape_cast %90 : vector<8x16xf32> to vector<1x8x16xf32>
    tpu.vector_store %arg19[%c0_50, %c0_51, %c0_52], %93 {strides = array<i32>} : memref<2x8x16xf32, #tpu.memory_space<vmem>>, vector<1x8x16xf32>,
    %c0_53 = arith.constant 0 : index
    %c0_54 = arith.constant 0 : index
    %c0_55 = arith.constant 0 : index
    %94 = vector.load %arg17[%c0_53, %c0_54, %c0_55] : memref<2x8x1xf32, #tpu.memory_space<vmem>>, vector<1x8x1xf32>
    %95 = vector.shape_cast %94 : vector<1x8x1xf32> to vector<8x1xf32>
    %96 = vector.shape_cast %70 : vector<8x1xf32> to vector<1x8x1xf32>
    tpu.vector_store %arg17[%c0_53, %c0_54, %c0_55], %96 {strides = array<i32>} : memref<2x8x1xf32, #tpu.memory_space<vmem>>, vector<1x8x1xf32>,
    %c1 = arith.constant 1 : index
    %c0_56 = arith.constant 0 : index
    %c0_57 = arith.constant 0 : index
    %97 = vector.load %arg16[%c1, %c0_56, %c0_57] : memref<2x8x16xf32, #tpu.memory_space<vmem>>, vector<1x8x16xf32>
    %98 = vector.shape_cast %97 : vector<1x8x16xf32> to vector<8x16xf32>
    %cst_58 = arith.constant dense<0.000000e+00> : vector<8x8xf32>
    %99 = tpu.matmul %98, %51, %cst_58 {dimension_numbers = #tpu.dot_dimension_numbers<[1], [1], [0], [0], [0, 0, 1, 0], [], []>} : vector<8x16xf32>, vector<8x16xf32>, vector<8x8xf32> -> vector<8x8xf32>
    %cst_59 = arith.constant 2.500000e-01 : f32
    %100 = vector.broadcast %cst_59 : f32 to vector<8x8xf32>
    %101 = arith.mulf %99, %100 : vector<8x8xf32>
    %cst_60 = arith.constant -1.000000e+30 : f32
    %102 = vector.broadcast %cst_60 : f32 to vector<8x8xf32>
    %103 = arith.select %58, %102, %101 : vector<8x8xi1>, vector<8x8xf32>
    %c1_61 = arith.constant 1 : index
    %c0_62 = arith.constant 0 : index
    %c0_63 = arith.constant 0 : index
    %104 = vector.load %arg17[%c1_61, %c0_62, %c0_63] : memref<2x8x1xf32, #tpu.memory_space<vmem>>, vector<1x8x1xf32>
    %105 = vector.shape_cast %104 : vector<1x8x1xf32> to vector<8x1xf32>
    %cst_64 = arith.constant dense<0xFF800000> : vector<8xf32>
    %106 = vector.multi_reduction <maximumf>, %103, %cst_64 [1] : vector<8x8xf32> to vector<8xf32>
    %107 = vector.shape_cast %106 : vector<8xf32> to vector<8x1xf32>
    %108 = arith.maximumf %105, %107 : vector<8x1xf32>
    %109 = arith.subf %105, %108 : vector<8x1xf32>
    %110 = math.exp %109 : vector<8x1xf32>
    %111 = vector.broadcast %108 : vector<8x1xf32> to vector<8x8xf32>
    %112 = arith.subf %103, %111 : vector<8x8xf32>
    %113 = math.exp %112 : vector<8x8xf32>
    %c1_65 = arith.constant 1 : index
    %c0_66 = arith.constant 0 : index
    %c0_67 = arith.constant 0 : index
    %114 = vector.load %arg18[%c1_65, %c0_66, %c0_67] : memref<2x8x1xf32, #tpu.memory_space<vmem>>, vector<1x8x1xf32>
    %115 = vector.shape_cast %114 : vector<1x8x1xf32> to vector<8x1xf32>
    %116 = arith.mulf %110, %115 : vector<8x1xf32>
    %cst_68 = arith.constant dense<0.000000e+00> : vector<8xf32>
    %117 = vector.multi_reduction <add>, %113, %cst_68 [1] : vector<8x8xf32> to vector<8xf32>
    %118 = vector.shape_cast %117 : vector<8xf32> to vector<8x1xf32>
    %119 = arith.addf %116, %118 : vector<8x1xf32>
    %c1_69 = arith.constant 1 : index
    %c0_70 = arith.constant 0 : index
    %c0_71 = arith.constant 0 : index
    %120 = vector.load %arg18[%c1_69, %c0_70, %c0_71] : memref<2x8x1xf32, #tpu.memory_space<vmem>>, vector<1x8x1xf32>
    %121 = vector.shape_cast %120 : vector<1x8x1xf32> to vector<8x1xf32>
    %122 = vector.shape_cast %119 : vector<8x1xf32> to vector<1x8x1xf32>
    tpu.vector_store %arg18[%c1_69, %c0_70, %c0_71], %122 {strides = array<i32>} : memref<2x8x1xf32, #tpu.memory_space<vmem>>, vector<1x8x1xf32>,
    %c1_72 = arith.constant 1 : index
    %c0_73 = arith.constant 0 : index
    %c0_74 = arith.constant 0 : index
    %123 = vector.load %arg19[%c1_72, %c0_73, %c0_74] : memref<2x8x16xf32, #tpu.memory_space<vmem>>, vector<1x8x16xf32>
    %124 = vector.shape_cast %123 : vector<1x8x16xf32> to vector<8x16xf32>
    %125 = vector.broadcast %110 : vector<8x1xf32> to vector<8x16xf32>
    %126 = arith.mulf %125, %124 : vector<8x16xf32>
    %cst_75 = arith.constant dense<0.000000e+00> : vector<8x16xf32>
    %127 = tpu.matmul %113, %28, %cst_75 {dimension_numbers = #tpu.dot_dimension_numbers<[1], [0], [0], [1], [0, 0, 1, 1], [], []>} : vector<8x8xf32>, vector<8x16xf32>, vector<8x16xf32> -> vector<8x16xf32>
    %128 = arith.addf %126, %127 : vector<8x16xf32>
    %c1_76 = arith.constant 1 : index
    %c0_77 = arith.constant 0 : index
    %c0_78 = arith.constant 0 : index
    %129 = vector.load %arg19[%c1_76, %c0_77, %c0_78] : memref<2x8x16xf32, #tpu.memory_space<vmem>>, vector<1x8x16xf32>
    %130 = vector.shape_cast %129 : vector<1x8x16xf32> to vector<8x16xf32>
    %131 = vector.shape_cast %128 : vector<8x16xf32> to vector<1x8x16xf32>
    tpu.vector_store %arg19[%c1_76, %c0_77, %c0_78], %131 {strides = array<i32>} : memref<2x8x16xf32, #tpu.memory_space<vmem>>, vector<1x8x16xf32>,
    %c1_79 = arith.constant 1 : index
    %c0_80 = arith.constant 0 : index
    %c0_81 = arith.constant 0 : index
    %132 = vector.load %arg17[%c1_79, %c0_80, %c0_81] : memref<2x8x1xf32, #tpu.memory_space<vmem>>, vector<1x8x1xf32>
    %133 = vector.shape_cast %132 : vector<1x8x1xf32> to vector<8x1xf32>
    %134 = vector.shape_cast %108 : vector<8x1xf32> to vector<1x8x1xf32>
    tpu.vector_store %arg17[%c1_79, %c0_80, %c0_81], %134 {strides = array<i32>} : memref<2x8x1xf32, #tpu.memory_space<vmem>>, vector<1x8x1xf32>,
    %c0_i32_82 = arith.constant 0 : i32
    %135 = arith.cmpi eq, %arg3, %c0_i32_82 : i32
    %136 = arith.extui %135 : i1 to i32
    %c0_i32_83 = arith.constant 0 : i32
    %137 = arith.cmpi ne, %136, %c0_i32_83 : i32
    scf.if %137 {
      %c0_86 = arith.constant 0 : index
      %c0_87 = arith.constant 0 : index
      %c0_88 = arith.constant 0 : index
      %143 = vector.load %arg13[%c0_86, %c0_87, %c0_88] : memref<1x32x64xf32, #tpu.memory_space<vmem>>, vector<1x32x64xf32>
      %144 = vector.shape_cast %143 : vector<1x32x64xf32> to vector<32x64xf32>
      %c0_89 = arith.constant 0 : index
      %c0_90 = arith.constant 0 : index
      %c0_91 = arith.constant 0 : index
      %145 = vector.load %arg19[%c0_89, %c0_90, %c0_91] : memref<2x8x16xf32, #tpu.memory_space<vmem>>, vector<1x8x16xf32>
      %146 = vector.shape_cast %145 : vector<1x8x16xf32> to vector<8x16xf32>
      %c0_92 = arith.constant 0 : index
      %c0_93 = arith.constant 0 : index
      %c0_94 = arith.constant 0 : index
      %147 = vector.load %arg18[%c0_92, %c0_93, %c0_94] : memref<2x8x1xf32, #tpu.memory_space<vmem>>, vector<1x8x1xf32>
      %148 = vector.shape_cast %147 : vector<1x8x1xf32> to vector<8x1xf32>
      %149 = tpu.reciprocal %148 {approx = true} : vector<8x1xf32> -> vector<8x1xf32>
      %150 = vector.broadcast %149 : vector<8x1xf32> to vector<8x16xf32>
      %151 = arith.mulf %146, %150 : vector<8x16xf32>
      %c0_95 = arith.constant 0 : index
      %c0_96 = arith.constant 0 : index
      %152 = vector.load %arg20[%c0_95, %c0_96] : memref<8x64xf32, #tpu.memory_space<vmem>>, vector<8x64xf32>
      %153 = vector.extract_strided_slice %144 {offsets = [0, 0], sizes = [16, 64], strides = [1, 1]} : vector<32x64xf32> to vector<16x64xf32>
      %cst_97 = arith.constant dense<0.000000e+00> : vector<8x64xf32>
      %154 = tpu.matmul %151, %153, %cst_97 {dimension_numbers = #tpu.dot_dimension_numbers<[1], [0], [0], [1], [0, 0, 1, 1], [], []>} : vector<8x16xf32>, vector<16x64xf32>, vector<8x64xf32> -> vector<8x64xf32>
      %155 = arith.addf %152, %154 : vector<8x64xf32>
      %c0_98 = arith.constant 0 : index
      %c0_99 = arith.constant 0 : index
      %156 = vector.load %arg20[%c0_98, %c0_99] : memref<8x64xf32, #tpu.memory_space<vmem>>, vector<8x64xf32>
      tpu.vector_store %arg20[%c0_98, %c0_99], %155 {strides = array<i32>} : memref<8x64xf32, #tpu.memory_space<vmem>>, vector<8x64xf32>,
      %c1_100 = arith.constant 1 : index
      %c0_101 = arith.constant 0 : index
      %c0_102 = arith.constant 0 : index
      %157 = vector.load %arg19[%c1_100, %c0_101, %c0_102] : memref<2x8x16xf32, #tpu.memory_space<vmem>>, vector<1x8x16xf32>
      %158 = vector.shape_cast %157 : vector<1x8x16xf32> to vector<8x16xf32>
      %c1_103 = arith.constant 1 : index
      %c0_104 = arith.constant 0 : index
      %c0_105 = arith.constant 0 : index
      %159 = vector.load %arg18[%c1_103, %c0_104, %c0_105] : memref<2x8x1xf32, #tpu.memory_space<vmem>>, vector<1x8x1xf32>
      %160 = vector.shape_cast %159 : vector<1x8x1xf32> to vector<8x1xf32>
      %161 = tpu.reciprocal %160 {approx = true} : vector<8x1xf32> -> vector<8x1xf32>
      %162 = vector.broadcast %161 : vector<8x1xf32> to vector<8x16xf32>
      %163 = arith.mulf %158, %162 : vector<8x16xf32>
      %c0_106 = arith.constant 0 : index
      %c0_107 = arith.constant 0 : index
      %164 = vector.load %arg20[%c0_106, %c0_107] : memref<8x64xf32, #tpu.memory_space<vmem>>, vector<8x64xf32>
      %165 = vector.extract_strided_slice %144 {offsets = [16, 0], sizes = [16, 64], strides = [1, 1]} : vector<32x64xf32> to vector<16x64xf32>
      %cst_108 = arith.constant dense<0.000000e+00> : vector<8x64xf32>
      %166 = tpu.matmul %163, %165, %cst_108 {dimension_numbers = #tpu.dot_dimension_numbers<[1], [0], [0], [1], [0, 0, 1, 1], [], []>} : vector<8x16xf32>, vector<16x64xf32>, vector<8x64xf32> -> vector<8x64xf32>
      %167 = arith.addf %164, %166 : vector<8x64xf32>
      %c0_109 = arith.constant 0 : index
      %c0_110 = arith.constant 0 : index
      %168 = vector.load %arg20[%c0_109, %c0_110] : memref<8x64xf32, #tpu.memory_space<vmem>>, vector<8x64xf32>
      tpu.vector_store %arg20[%c0_109, %c0_110], %167 {strides = array<i32>} : memref<8x64xf32, #tpu.memory_space<vmem>>, vector<8x64xf32>,
    } else {
    }
    %c1_i32 = arith.constant 1 : i32
    %138 = arith.cmpi eq, %arg2, %c1_i32 : i32
    %c0_i32_84 = arith.constant 0 : i32
    %139 = arith.cmpi eq, %arg3, %c0_i32_84 : i32
    %140 = arith.andi %138, %139 : i1
    %141 = arith.extui %140 : i1 to i32
    %c0_i32_85 = arith.constant 0 : i32
    %142 = arith.cmpi ne, %141, %c0_i32_85 : i32
    scf.if %142 {
      %c0_86 = arith.constant 0 : index
      %c0_87 = arith.constant 0 : index
      %c0_88 = arith.constant 0 : index
      %143 = vector.load %arg4[%c0_86, %c0_87, %c0_88] : memref<1x8x64xf32, #tpu.memory_space<vmem>>, vector<1x8x64xf32>
      %144 = vector.shape_cast %143 : vector<1x8x64xf32> to vector<8x64xf32>
      %c0_89 = arith.constant 0 : index
      %c0_90 = arith.constant 0 : index
      %145 = vector.load %arg20[%c0_89, %c0_90] : memref<8x64xf32, #tpu.memory_space<vmem>>, vector<8x64xf32>
      %146 = arith.addf %144, %145 : vector<8x64xf32>
      %c0_91 = arith.constant 0 : index
      %c0_92 = arith.constant 0 : index
      %c0_93 = arith.constant 0 : index
      %147 = vector.load %arg14[%c0_91, %c0_92, %c0_93] : memref<1x8x64xf32, #tpu.memory_space<vmem>>, vector<1x8x64xf32>
      %148 = vector.shape_cast %147 : vector<1x8x64xf32> to vector<8x64xf32>
      %149 = vector.shape_cast %146 : vector<8x64xf32> to vector<1x8x64xf32>
      tpu.vector_store %arg14[%c0_91, %c0_92, %c0_93], %149 {strides = array<i32>} : memref<1x8x64xf32, #tpu.memory_space<vmem>>, vector<1x8x64xf32>,
    } else {
    }
    return
  }
  func.func @transform_0(%arg0: i32, %arg1: i32, %arg2: i32, %arg3: i32) -> (i32, i32, i32) {
    %c0_i32 = arith.constant 0 : i32
    %c0_i32_0 = arith.constant 0 : i32
    return %arg0, %arg1, %c0_i32 : i32, i32, i32
  }
  func.func @transform_1(%arg0: i32, %arg1: i32, %arg2: i32, %arg3: i32) -> (i32, i32, i32) {
    %c0_i32 = arith.constant 0 : i32
    %c0_i32_0 = arith.constant 0 : i32
    return %arg0, %arg3, %c0_i32 : i32, i32, i32
  }
  func.func @transform_2(%arg0: i32, %arg1: i32, %arg2: i32, %arg3: i32) -> (i32, i32, i32) {
    %c0_i32 = arith.constant 0 : i32
    %c0_i32_0 = arith.constant 0 : i32
    return %arg0, %arg1, %c0_i32 : i32, i32, i32
  }
  func.func @transform_3(%arg0: i32, %arg1: i32, %arg2: i32, %arg3: i32) -> (i32, i32, i32) {
    %c0_i32 = arith.constant 0 : i32
    %c0_i32_0 = arith.constant 0 : i32
    return %arg0, %arg3, %c0_i32 : i32, i32, i32
  }
  func.func @transform_4(%arg0: i32, %arg1: i32, %arg2: i32, %arg3: i32) -> (i32, i32, i32) {
    %c0_i32 = arith.constant 0 : i32
    %c0_i32_0 = arith.constant 0 : i32
    return %arg0, %c0_i32, %arg3 : i32, i32, i32
  }
  func.func @transform_5(%arg0: i32, %arg1: i32, %arg2: i32, %arg3: i32) -> (i32, i32) {
    %c0_i32 = arith.constant 0 : i32
    %c0_i32_0 = arith.constant 0 : i32
    %c0_i32_1 = arith.constant 0 : i32
    return %c0_i32, %c0_i32_0 : i32, i32
  }
  func.func @transform_6(%arg0: i32, %arg1: i32, %arg2: i32, %arg3: i32) -> (i32, i32, i32) {
    %c0_i32 = arith.constant 0 : i32
    %c0_i32_0 = arith.constant 0 : i32
    %c0_i32_1 = arith.constant 0 : i32
    return %arg2, %c0_i32, %c0_i32_0 : i32, i32, i32
  }
  func.func @transform_7(%arg0: i32, %arg1: i32, %arg2: i32, %arg3: i32) -> (i32, i32, i32) {
    %c0_i32 = arith.constant 0 : i32
    %c0_i32_0 = arith.constant 0 : i32
    %c0_i32_1 = arith.constant 0 : i32
    return %arg2, %c0_i32, %c0_i32_0 : i32, i32, i32
  }
  func.func @transform_8(%arg0: i32, %arg1: i32, %arg2: i32, %arg3: i32) -> (i32, i32, i32) {
    %c0_i32 = arith.constant 0 : i32
    %c0_i32_0 = arith.constant 0 : i32
    %c0_i32_1 = arith.constant 0 : i32
    return %arg2, %c0_i32, %c0_i32_0 : i32, i32, i32
  }
  func.func @transform_9(%arg0: i32, %arg1: i32, %arg2: i32, %arg3: i32) -> (i32, i32, i32) {
    %c0_i32 = arith.constant 0 : i32
    %c0_i32_0 = arith.constant 0 : i32
    %c0_i32_1 = arith.constant 0 : i32
    return %arg2, %c0_i32, %c0_i32_0 : i32, i32, i32
  }
  func.func @transform_10(%arg0: i32, %arg1: i32, %arg2: i32, %arg3: i32) -> (i32, i32, i32) {
    %c0_i32 = arith.constant 0 : i32
    %c0_i32_0 = arith.constant 0 : i32
    return %arg0, %arg1, %c0_i32 : i32, i32, i32
  }
}

</mosaic_0001>

<bundles_post_ra>
// kernel: tpu_custom_call.1
= control target key start
LH: loop header
LB: loop body
LE: loop exit
PB: predicated region body
PF: predicated region fallthrough
CT: control target
= control target key end

     0   :  { %s3137_s0 = inlined_call_operand.vmem [shape: f32[2,8,64], index: 0, kind: input, shape index: {}]   ;;  %s3138_s1 = inlined_call_operand.vmem [shape: f32[2,8,64], index: 1, kind: input, shape index: {}]   ;;  %s3139_s2 = inlined_call_operand.vmem [shape: s32[2,8,1], index: 2, kind: input, shape index: {}]   ;;  %s3140_s3 = inlined_call_operand.vmem [shape: s32[2,8,1], index: 3, kind: input, shape index: {}]   ;;  %s3141_s4 = inlined_call_operand.vmem [shape: s32[2,1,8], index: 4, kind: input, shape index: {}]   ;;  %s3142_s5 = inlined_call_operand.vmem [shape: f32[1,64], index: 5, kind: input, shape index: {}]   ;;  %s3143_s6 = inlined_call_operand.vmem [shape: f32[2,64,32], index: 6, kind: input, shape index: {}]   ;;  %s3144_s7 = inlined_call_operand.vmem [shape: f32[2,64,16], index: 7, kind: input, shape index: {}]   ;;  %s3145_s8 = inlined_call_operand.vmem [shape: f32[2,64,16], index: 8, kind: input, shape index: {}]   ;;  %s3146_s9 = inlined_call_operand.vmem [shape: f32[2,32,64], index: 9, kind: input, shape index: {}]   ;;  %s3147_s10 = inlined_call_operand.hbm [shape: f32[2,8,64], index: 10, kind: output, shape index: {}]  }
   0x1   :  { %3161 = sst [smem:[#allocation22_spill]] %s3137_s0 }
   0x2   :  { %3162 = sst [smem:[#allocation23_spill]] %s3142_s5 }
   0x3   :  { %3163 = sst [smem:[#allocation24_spill]] %s3147_s10 }
   0x4   :  { %15 = vsyncpa [#allocation9], 0 }
   0x5   :  { %17 = vsyncpa [#allocation9 + $0x1], 0  ;;  %s2690_s13 = smov 0   ;;  %s2692_s14 = smov 0  }
   0x6   :  { %s2694_s15 = smov 0   ;;  %s2696_s16 = smov 0  }
   0x7   :  { %s2698_s17 = smov 0   ;;  %s2700_s18 = smov 0  }
   0x8   :  { %s2702_s19 = smov 0   ;;  %s2704_s20 = smov 0  }
   0x9 LB: > { %3164 = sst [smem:[#allocation11_spill]] %s2587_s13  ;;  %s2165_s21 = sadd.s32 4294967295, %s2615_s20   ;;  %s2615_s20 = sphi %s2704_s20, %s23_s20   ;;  %s2611_s19 = sphi %s2702_s19, %s3196_s19   ;;  %s2607_s18 = sphi %s2700_s18, %s3195_s18   ;;  %s2603_s17 = sphi %s2698_s17, %s3194_s17   ;;  %s2599_s16 = sphi %s2696_s16, %s3193_s16   ;;  %s2595_s15 = sphi %s2694_s15, %s3192_s15   ;;  %s2591_s14 = sphi %s2692_s14, %s3191_s14   ;;  %s2587_s13 = sphi %s2690_s13, %s3190_s13  }
   0xa   : > { %3165 = sst [smem:[#allocation12_spill]] %s2591_s14  ;;  %s2166_s22 = sadd.s32 4294967294, %s2615_s20  }
   0xb   : > { %3166 = sst [smem:[#allocation13_spill]] %s2595_s15  ;;  %s41_s23 = sadd.s32 1, %s2607_s18 }
   0xc   : > { %3167 = sst [smem:[#allocation14_spill]] %s2607_s18  ;;  %p43_p0 = scmp.ge.s32.totalorder %s41_s23, 2 }
   0xd   : > { %3168 = sst [smem:[#allocation15_spill]] %s2611_s19  ;;  %s49_s24 = sadd.s32 1, %s2611_s19 }
   0xe   : > { %3169 = sst [smem:[#allocation16_spill]] %s2615_s20  ;;  %p333_p1 = scmp.ne.s32.totalorder %s2595_s15, %s2591_s14 }
   0xf   : > { %p334_p2 = scmp.eq.s32.totalorder %s2165_s21, 3  ;;  %s3198_s23 = smov (%p43_p0, %s41_s23), 0 }
  0x10   : > { %3170 = sst [smem:[#allocation17_spill]] %s3198_s23  ;;  %s3200_s24 = smov (!%p43_p0, %s49_s24), %s2611_s19 }
  0x11   : > { %p2739_p3 = por %p334_p2, %p333_p1  ;;  %p339_p4 = scmp.ne.s32.totalorder %s2591_s14, %s2587_s13 }
  0x12   : > { %p51_p5 = scmp.ge.s32.totalorder %s3200_s24, 2  ;;  %p340_p6 = scmp.eq.s32.totalorder %s2166_s22, 3 }
  0x13   : > { %s3171_s25 = scalar_select %p2739_p3, 1, 0 }
  0x14   : > { %p2169_p7 = scmp.ge.s32.totalorder %s2615_s20, 1  ;;  %p442_p8 = scmp.lt.s32.totalorder %s2615_s20, 5 }
  0x15   : > { %3172 = sst [smem:[#allocation18_spill]] %s3171_s25  ;;  %s3202_s24 = smov (%p51_p5, %s3200_s24), 0 }
  0x16   : > { %3173 = sst [smem:[#allocation19_spill]] %s3202_s24  ;;  %p2749_p9 = por %p340_p6, %p339_p4 }
  0x17   : > { %p443_p10 = pnand %p2169_p7, %p442_p8  ;;  %s318_s27 = ssub.s32 %s2611_s19, %s3202_s24 }
  0x18   : > { %s3174_s26 = scalar_select %p2749_p9, 1, 0 }
  0x19   : > { %s323_s28 = sadd.s32 1, %s2595_s15  ;;  %p321_p11 = scmp.eq.s32.totalorder %s318_s27, 0 }
  0x1a   : > { %3175 = sst [smem:[#allocation20_spill]] %s3174_s26  ;;  %446 = sbr.rel (%p443_p10) target bundleno = 2265 (0x8d9), region = 60 }
  0x1b   : > { %s2757_s29 = scalar_select %p321_p11, %s2595_s15, %s323_s28  }
  0x1c   : > { %s3149_s30 = sand.u32 (!%p443_p10), 1, %s2591_s14   ;;  %p529_p12 = scmp.lt.s32.totalorder (!%p443_p10), %s2603_s17, 1 }
  0x1d   : > { %3176 = sst [smem:[#allocation21_spill]] %s2757_s29  ;;  %s2768_s21 = sshll.u32 (!%p443_p10), %s3149_s30, 3 }
  0x1e   : > { %s3177_s5 = sld [smem:[#allocation23_spill]] (!%p443_p10)  ;;  %p563_p13 = scmp.lt.s32.totalorder (!%p443_p10), %s2599_s16, 1 }
  0x1f   : > { %p584_p0 = scmp.eq.s32.totalorder (!%p443_p10), %s2599_s16, 0  ;;  %s3178_s0 = sld [smem:[#allocation22_spill]] (!%p443_p10) }
  0x21   : > { %s2773_s22 = scalar_select %p529_p12, %s2603_s17, 1 }
  0x22   : > { %s564_s27 = scalar_select %p563_p13, %s2599_s16, 1 }
  0x23   : > { %s2777_s28 = sshll.u32 %s2773_s22, 3  ;;  %589 = sbr.rel (!%p584_p0) target bundleno = 204 (0xcc), region = 64  ;;  %vm590_vm0 = vcmask (%p584_p0), 523264   ;;  %v2617_v2 = vmov (%p584_p0), 0.0   ;;  %v603_v7 = vlaneseq (%p584_p0) }
  0x24   : > { %v2764_v0 = vld [vmem:[%s3177_s5] sm:$0x1]  ;;  %s549_s13 = scalar_lea.vmem %s3139_s2, %s2777_s28  ;;  %s556_s24 = scalar_lea.vmem %s3140_s3, %s2777_s28  ;;  %591 = vst.msk [vmem:[#allocation7] sm:$0xff] (%p584_p0), %vm590_vm0, %v2617_v2 }
  0x25   : > { %s2787_s5 = scalar_lea.vmem %s3178_s0, %s2777_s28  ;;  %s2217_s10 = sshll.u32 %s564_s27, 6  ;;  %v604_v9 = vshrl.u32 (%p584_p0), %v603_v7, 7 }
  0x26   : > { %s2220_s25 = sshll.u32 %s564_s27, 5  ;;  %s2804_s30 = scalar_lea.vmem %s3143_s6, %s2217_s10  ;;  %v592_v1 = vld [vmem:[%s2787_s5] sm:$0xff] (%p584_p0) }
  0x27   : > { %s2809_s18 = scalar_lea.vmem %s3144_s7, %s2217_s10  ;;  %s2814_s15 = scalar_lea.vmem %s3145_s8, %s2217_s10  ;;  %v593_v3 = vmul.f32 (%p584_p0), %v592_v1, %v592_v1  ;;  %v605_v10 = vsub.s32 (%p584_p0), 0, %v604_v9 }
  0x28   : > { %s2819_s23 = scalar_lea.vmem %s3146_s9, %s2220_s25  ;;  %s528_s27 = scalar_lea.vmem [#allocation8], %s2768_s21 }
  0x29   : > { %v594_v4 = vsel (%p584_p0), %vm590_vm0, %v593_v3, 0.0  ;;  %v606_v11 = vrot.slane (%p584_p0), %v2764_v0, %v605_v10 }
  0x2a   : > { %595 = vadd.xlane.f32.xlu0 %v594_v4 }
  0xb7   : > { %v596_v5 = vpop.xlane.xlu0 %595 }
  0xb8   : > { %v598_v6 = vmul.f32 0.015625, %v596_v5 }
  0xba   : > { %v599_v8 = vadd.f32 1e-06, %v598_v6 }
  0xbc   : > { %2493 = vrsqrt.f32 %v599_v8 }
  0xc6   : > { %v2494_v12 = vpop.eup %2493 }
  0xc7   : > { %v601_v13 = vmul.f32 %v2494_v12, %v592_v1 }
  0xc9   : > { %v608_v14 = vmul.f32 %v606_v11, %v601_v13 }
  0xcb   : > { %609 = vst.msk [vmem:[#allocation2] sm:$0xff] %vm590_vm0, %v608_v14 }
  0xcc PF: > { %vm630_vm1 = vcmask 523264   ;;  %s3179_s14 = scalar_lea.vmem %s3138_s1, %s2777_s28  ;;  %v622_v16 = vld [vmem:[%s2804_s30] sm:$0xff]  ;;  %v623_v17 = vld [vmem:[%s2804_s30 + $0x8] sm:$0xff]  ;;  %v2618_v19 = vmov 0.0|0.0   ;;  %v2619_v20 = vmov 0   ;;  %v624_v22 = vld [vmem:[%s2804_s30 + $0x10] sm:$0xff]  ;;  %v705_v62 = vlaneseq }
  0xcd   : > { %v2834_v15 = vld [vmem:[%s3179_s14] sm:$0xff]  ;;  %2355 = vmatprep.subr.bf16.mxu0 %v2618_v19  ;;  %2495 = vset.pattern.permute.xlu0 %v2619_v20  ;;  %v2356_v21 = vpack.c.bf16 %v623_v17, %v622_v16  ;;  %v625_v23 = vld [vmem:[%s2804_s30 + $0x18] sm:$0xff]  ;;  %vm2620_vm2 = vmmov 0   ;;  %v2621_v25 = vmov 0.0   ;;  %v627_v30 = vld [vmem:[%s2804_s30 + $0x28] sm:$0xff]  ;;  %s2629_s28 = smov 120  }
  0xce   : > { %v975_v18 = vmul.f32 %v2834_v15, %v2834_v15  ;;  %2496 = vset.pattern.permute.xlu1 %v2619_v20  ;;  %v1151_v24 = vld [vmem:[%s556_s24] sm:$0xff]  ;;  %2280 = vmatprep.mubr.msk.f32.mxu0 %vm2620_vm2, %v2621_v25  ;;  %v2359_v27 = vpack.c.bf16 %v625_v23, %v624_v22  ;;  %v628_v32 = vld [vmem:[%s2804_s30 + $0x30] sm:$0xff]  ;;  %v629_v33 = vld [vmem:[%s2804_s30 + $0x38] sm:$0xff]  ;;  %v706_v63 = vand.u32 127, %v705_v62  ;;  %v2622_v23 = vmov 683565275  }
  0xcf   : > { %2357 = vmatpush3.bf16.msra.mxu0 %v2356_v21  ;;  %v1158_v28 = vcvt.s32.f32 %v1151_v24  ;;  %2367 = vmatprep.subr.bf16.mxu1 %v2618_v19  ;;  %v626_v29 = vld [vmem:[%s2804_s30 + $0x20] sm:$0xff]  ;;  %v2365_v34 = vpack.c.bf16 %v629_v33, %v628_v32  ;;  %v993_v38 = vld [vmem:[%s2809_s18 + $0x8] sm:$0xff]  ;;  %v994_v44 = vld [vmem:[%s2809_s18 + $0x10] sm:$0xff]  ;;  %v987_v21 = vshrl.u32 %v705_v62, 7  ;;  %v2626_v33 = vmov 920167782  }
  0xd0   : > { %v977_v26 = vsel %vm630_vm1, %v975_v18, 0.0  ;;  %2358 = vmatprep.subr.bf16.mxu0 %v2618_v19  ;;  %2299 = vmatprep.mubr.msk.f32.mxu1 %vm2620_vm2, %v2621_v25  ;;  %v2362_v31 = vpack.c.bf16 %v627_v30, %v626_v29  ;;  %v2867_v36 = vld [vmem:[%s549_s13] sm:$0xff]  ;;  %v1074_v41 = vld [vmem:[%s2814_s15 + $0x8] sm:$0xff]  ;;  %v995_v45 = vld [vmem:[%s2809_s18 + $0x18] sm:$0xff]  ;;  %v707_v1 = vcvt.s32.f32 %v706_v63  ;;  %s2628_s13 = smov 8   ;;  %s2630_s30 = smov 104  }
  0xd1   : > { %978 = vadd.xlane.f32.xlu0 %v977_v26  ;;  %1161 = vperm.xlu1 %2496, %v1158_v28   ;;  %v992_v37 = vld [vmem:[%s2809_s18] sm:$0xff]  ;;  %v711_v43 = vcvt.s32.f32 %v2867_v36  ;;  %v1075_v46 = vld [vmem:[%s2814_s15 + $0x10] sm:$0xff]  ;;  %v2371_v47 = vpack.c.bf16 %v995_v45, %v994_v44  ;;  %v1076_v48 = vld [vmem:[%s2814_s15 + $0x18] sm:$0xff]  ;;  %v2623_v26 = vmov 2475754826   ;;  %s2631_s12 = smov 16  }
  0xd2   : > { %v621_v35 = vld [vmem:[#allocation2] sm:$0xff]  ;;  %v2368_v40 = vpack.c.bf16 %v993_v38, %v992_v37  ;;  %v2383_v49 = vpack.c.bf16 %v1076_v48, %v1075_v46  ;;  %v997_v51 = vld [vmem:[%s2809_s18 + $0x28] sm:$0xff]  ;;  %v998_v56 = vld [vmem:[%s2809_s18 + $0x30] sm:$0xff]  ;;  %v708_v2 = vmul.f32 -1.1512926, %v707_v1  ;;  %p1956_p1 = scmp.eq.s32.totalorder %s2599_s16, 1 }
  0xd3   : > { %2360 = vmatpush3.bf16.msra.mxu0 %v2359_v27  ;;  %v1073_v39 = vld [vmem:[%s2814_s15] sm:$0xff]  ;;  %v1078_v54 = vld [vmem:[%s2814_s15 + $0x28] sm:$0xff]  ;;  %v999_v57 = vld [vmem:[%s2809_s18 + $0x38] sm:$0xff]  ;;  %v2624_v28 = vmov 2131351028  }
  0xd4   : > { %2361 = vmatprep.subr.bf16.mxu0 %v2618_v19  ;;  %v2380_v42 = vpack.c.bf16 %v1074_v41, %v1073_v39  ;;  %2369 = vmatpush3.bf16.msra.mxu1 %v2368_v40  ;;  %v996_v50 = vld [vmem:[%s2809_s18 + $0x20] sm:$0xff]  ;;  %v1079_v58 = vld [vmem:[%s2814_s15 + $0x30] sm:$0xff]  ;;  %v2377_v59 = vpack.c.bf16 %v999_v57, %v998_v56  ;;  %v1080_v60 = vld [vmem:[%s2814_s15 + $0x38] sm:$0xff]  ;;  %v709_v3 = vmul.f32 1.442695, %v708_v2 }
  0xd5   : > { %2370 = vmatprep.subr.bf16.mxu1 %v2618_v19  ;;  %v1077_v52 = vld [vmem:[%s2814_s15 + $0x20] sm:$0xff]  ;;  %v2374_v53 = vpack.c.bf16 %v997_v51, %v996_v50  ;;  %v2389_v61 = vpack.c.bf16 %v1080_v60, %v1079_v58  ;;  %v988_v60 = vsub.s32 0, %v987_v21  ;;  %s3182_s15 = scalar_lea.vmem %s3141_s4, %s2773_s22  ;;  %s2633_s22 = smov 112  }
  0xd6   : > { %v2386_v55 = vpack.c.bf16 %v1078_v54, %v1077_v52  ;;  %2497 = vpow2.f32 %v709_v3 }
  0xd7   : > { %2363 = vmatpush3.bf16.msra.mxu0 %v2362_v31  ;;  %v2625_v31 = vmov 2102212464  }
  0xd8   : > { %2364 = vmatprep.subr.bf16.mxu0 %v2618_v19  ;;  %2372 = vmatpush3.bf16.msra.mxu1 %v2371_v47 }
  0xd9   : > { %2373 = vmatprep.subr.bf16.mxu1 %v2618_v19 }
  0xdb   : > { %2366 = vmatpush3.bf16.msra.mxu0 %v2365_v34 }
  0xdc   : > { %2379 = vmatprep.subr.bf16.mxu0 %v2618_v19  ;;  %2375 = vmatpush3.bf16.msra.mxu1 %v2374_v53 }
  0xdd   : > { %2376 = vmatprep.subr.bf16.mxu1 %v2618_v19 }
  0xde   : > { %2281 = vmatmul.mubr.msk.f32.vlgmr.msra.gmra.mrb[0].mxu0 %vm630_vm1, %v621_v35 }
  0xdf   : > { %2318 = vmatprep.mubr.msk.f32.mxu0 %vm2620_vm2, %v2621_v25  ;;  %2381 = vmatpush3.bf16.msra.mxu0 %v2380_v42  ;;  %v2627_v42 = vmov 1326507024  }
  0xe0   : > { %2382 = vmatprep.subr.bf16.mxu0 %v2618_v19  ;;  %2378 = vmatpush3.bf16.msra.mxu1 %v2377_v59  ;;  %v2498_v4 = vpop.eup %2497 }
  0xe1   : > { %2321 = vmatprep.subr.mxu1 %v2621_v25 }
  0xe3   : > { %2384 = vmatpush3.bf16.msra.mxu0 %v2383_v49 }
  0xe4   : > { %2385 = vmatprep.subr.bf16.mxu0 %v2618_v19 }
  0xe7   : > { %714 = vperm.xlu0 %2495, %v711_v43   ;;  %2387 = vmatpush3.bf16.msra.mxu0 %v2386_v55 }
  0xe8   : > { %2388 = vmatprep.subr.bf16.mxu0 %v2618_v19 }
  0xeb   : > { %2390 = vmatpush3.bf16.msra.mxu0 %v2389_v61 }
  0xec   : > { %2391 = vmatprep.subr.bf16.mxu0 %v2618_v19 }
 0x150   : > { %v1162_v5 = vpop.permute.xlu1 %1161 }
 0x151   : > { %v2897_v6 = vmul.f32 %v2498_v4, %v1162_v5 }
 0x153   : > { %v1168_v7 = vand.u32 2139095040, %v2897_v6  ;;  %v1165_v8 = vand.u32 2147483647, %v2897_v6 }
 0x155   : > { %v1169_v9 = vshrl.u32 %v1168_v7, 23  ;;  %v1172_v11 = vand.u32 8388607, %v1165_v8 }
 0x157   : > { %v2195_v10 = vadd.s32 4294967169, %v1169_v9  ;;  %v1173_v13 = vor.u32 8388608, %v1172_v11 }
 0x159   : > { %v1175_v12 = vadd.s32 1, %v2195_v10  ;;  %v1213_v35 = vshll.u32 %v1173_v13, 8  ;;  %v989_v10 = vrot.slane %v2764_v0, %v988_v60 }
 0x15b   : > { %vm1176_vm3 = vcmp.gt.s32.totalorder %v1175_v12, 0 }
 0x15c   : > { %v1177_v14 = vsel %vm1176_vm3, %v1175_v12, 0  ;;  %vm1167_vm3 = vcmp.lt.s32.totalorder %v2897_v6, 0 }
 0x15d   : > { %v1179_v17 = vand.u32 31, %v1177_v14  ;;  %v1178_v20 = vshrl.u32 %v1177_v14, 5 }
 0x15e   : > { %v979_v16 = vpop.xlane.xlu0 %978 }
 0x15f   : > { %v981_v18 = vmul.f32 0.015625, %v979_v16  ;;  %v1180_v22 = vsub.s32 32, %v1179_v17  ;;  %v1182_v24 = vshll.u32 %v2622_v23, %v1179_v17  ;;  %v1185_v27 = vshll.u32 %v2623_v26, %v1179_v17 }
 0x160   : > { %v1188_v29 = vshll.u32 %v2624_v28, %v1179_v17  ;;  %v1191_v32 = vshll.u32 %v2625_v31, %v1179_v17  ;;  %v1194_v34 = vshll.u32 %v2626_v33, %v1179_v17  ;;  %vm1197_vm4 = vcmp.lt.s32.totalorder %v1178_v20, 1 }
 0x161   : > { %v982_v30 = vadd.f32 1e-06, %v981_v18  ;;  %v1181_v37 = vshrl.u32 %v2622_v23, %v1180_v22  ;;  %v1183_v38 = vshrl.u32 %v2623_v26, %v1180_v22  ;;  %v1186_v39 = vshrl.u32 %v2624_v28, %v1180_v22 }
 0x162   : > { %v1189_v40 = vshrl.u32 %v2625_v31, %v1180_v22  ;;  %v1192_v41 = vshrl.u32 %v2626_v33, %v1180_v22  ;;  %v1195_v43 = vshrl.u32 %v2627_v42, %v1180_v22  ;;  %vm1198_vm5 = vcmp.lt.s32.totalorder %v1178_v20, 2 }
 0x163   : > { %2499 = vrsqrt.f32 %v982_v30  ;;  %v1184_v44 = vor.u32 %v1183_v38, %v1182_v24  ;;  %v1187_v45 = vor.u32 %v1186_v39, %v1185_v27  ;;  %vm1199_vm6 = vcmp.lt.s32.totalorder %v1178_v20, 3 }
 0x164   : > { %v1190_v46 = vor.u32 %v1189_v40, %v1188_v29  ;;  %v1193_v47 = vor.u32 %v1192_v41, %v1191_v32  ;;  %v1196_v48 = vor.u32 %v1195_v43, %v1194_v34  ;;  %vm1200_vm7 = vcmp.lt.s32.totalorder %v1178_v20, 4 }
 0x165   : > { %v1201_v50 = vsel %vm1197_vm4, %v1181_v37, %v1184_v44  ;;  %v1205_v52 = vsel %vm1197_vm4, %v1184_v44, %v1187_v45 }
 0x166   : > { %v715_v49 = vpop.permute.xlu0 %714  ;;  %v1202_v51 = vsel %vm1200_vm7, %v1190_v46, 2102212464  ;;  %v1209_v53 = vsel %vm1197_vm4, %v1187_v45, %v1190_v46  ;;  %v1206_v56 = vsel %vm1200_vm7, %v1193_v47, 920167782  ;;  %v1210_v57 = vsel %vm1200_vm7, %v1196_v48, 1326507024 }
 0x167   : > { %v2914_v54 = vmul.f32 %v2498_v4, %v715_v49  ;;  %v1203_v55 = vsel %vm1199_vm6, %v1187_v45, %v1202_v51  ;;  %v1207_v58 = vsel %vm1199_vm6, %v1190_v46, %v1206_v56  ;;  %v1211_v59 = vsel %vm1199_vm6, %v1193_v47, %v1210_v57 }
 0x168   : > { %v1204_v62 = vsel %vm1198_vm5, %v1201_v50, %v1203_v55  ;;  %v1208_v63 = vsel %vm1198_vm5, %v1205_v52, %v1207_v58  ;;  %v1212_v2 = vsel %vm1198_vm5, %v1209_v53, %v1211_v59  ;;  %vm2973_vm4 = vcmp.le.f32.partialorder %v1165_v8, 0.7853982 }
 0x169   : > { %v721_v61 = vand.u32 2139095040, %v2914_v54  ;;  %v718_v1 = vand.u32 2147483647, %v2914_v54  ;;  %v2921_v3 = vmul.u32.u64.low %v1213_v35, %v1208_v63  ;;  %v2922_v5 = vmul.u32.u64.high %v1213_v35, %v1208_v63, %v2921_v3 }
 0x16a   : > { %v2925_v7 = vmul.u32.u64.low %v1213_v35, %v1212_v2  ;;  %v2926_v9 = vmul.u32.u64.high %v1213_v35, %v1212_v2, %v2925_v7  ;;  %v1220_v13 = vmul.u32 %v1213_v35, %v1204_v62  ;;  %vm720_vm5 = vcmp.lt.s32.totalorder %v2914_v54, 0 }
 0x16b   : > { %v722_v4 = vshrl.u32 %v721_v61, 23  ;;  %v725_v14 = vand.u32 8388607, %v718_v1  ;;  %v1223_v16 = vadd.s32 1, %v2922_v5  ;;  %vm719_vm6 = vcmp.le.f32.partialorder %v718_v1, 0.7853982 }
 0x16c   : > { %vm1222_vm8 = vc.u32 %v2926_v9, %v2921_v3  ;;  %vm810_vm7 = vweird.f32 %v2914_v54 }
 0x16d   : > { %v2500_v11 = vpop.eup %2499  ;;  %v2185_v12 = vadd.s32 4294967169, %v722_v4  ;;  %v1224_v20 = vsel %vm1222_vm8, %v1223_v16, %v2922_v5  ;;  %v726_v0 = vor.u32 8388608, %v725_v14 }
 0x16e   : > { %v984_v17 = vmul.f32 %v2500_v11, %v2834_v15  ;;  %v1225_v22 = vadd.s32 %v1224_v20, %v1220_v13 }
 0x16f   : > { %v728_v18 = vadd.s32 1, %v2185_v12  ;;  %v766_v39 = vshll.u32 %v726_v0, 8 }
 0x170   : > { %v991_v21 = vmul.f32 %v989_v10, %v984_v17  ;;  %v1226_v29 = vadd.s32 536870912, %v1225_v22 }
 0x171   : > { %vm729_vm9 = vcmp.gt.s32.totalorder %v728_v18, 0 }
 0x172   : > { %v730_v24 = vsel %vm729_vm9, %v728_v18, 0  ;;  %2300 = vmatmul.mubr.msk.f32.vlgmr.msra.gmra.mrb[0].mxu1 %vm630_vm1, %v991_v21  ;;  %2319 = vmatmul.mubr.msk.f32.vlgmr.msra.gmra.mrb[2].mxu0 %vm630_vm1, %v991_v21  ;;  %v2953_v50 = vshrl.u32 %v1226_v29, 30  ;;  %v1221_v21 = vadd.s32 %v2921_v3, %v2926_v9 }
 0x173   : > { %v732_v27 = vand.u32 31, %v730_v24  ;;  %2323 = vmatprep.mubr.msk.f32.mxu1 %vm2620_vm2, %v2621_v25  ;;  %2345 = vmatprep.mubr.msk.f32.mxu0 %vm2620_vm2, %v2621_v25  ;;  %v731_v15 = vshrl.u32 %v730_v24, 5 }
 0x175   : > { %v733_v30 = vsub.s32 32, %v732_v27  ;;  %v735_v32 = vshll.u32 %v2622_v23, %v732_v27  ;;  %v738_v34 = vshll.u32 %v2623_v26, %v732_v27  ;;  %v741_v35 = vshll.u32 %v2624_v28, %v732_v27 }
 0x176   : > { %v744_v37 = vshll.u32 %v2625_v31, %v732_v27  ;;  %v747_v38 = vshll.u32 %v2626_v33, %v732_v27  ;;  %vm750_vm10 = vcmp.lt.s32.totalorder %v731_v15, 1  ;;  %vm753_vm11 = vcmp.lt.s32.totalorder %v731_v15, 4 }
 0x177   : > { %v734_v40 = vshrl.u32 %v2622_v23, %v733_v30  ;;  %v736_v41 = vshrl.u32 %v2623_v26, %v733_v30  ;;  %v739_v43 = vshrl.u32 %v2624_v28, %v733_v30  ;;  %v742_v44 = vshrl.u32 %v2625_v31, %v733_v30 }
 0x178   : > { %v745_v45 = vshrl.u32 %v2626_v33, %v733_v30  ;;  %v748_v46 = vshrl.u32 %v2627_v42, %v733_v30  ;;  %vm751_vm12 = vcmp.lt.s32.totalorder %v731_v15, 2  ;;  %vm752_vm13 = vcmp.lt.s32.totalorder %v731_v15, 3 }
 0x179   : > { %v737_v47 = vor.u32 %v736_v41, %v735_v32  ;;  %v740_v48 = vor.u32 %v739_v43, %v738_v34  ;;  %v743_v49 = vor.u32 %v742_v44, %v741_v35  ;;  %v1228_v42 = vshll.u32 %v2953_v50, 30 }
 0x17a   : > { %v746_v51 = vor.u32 %v745_v45, %v744_v37  ;;  %v749_v52 = vor.u32 %v748_v46, %v747_v38 }
 0x17b   : > { %v754_v23 = vsel %vm750_vm10, %v734_v40, %v737_v47  ;;  %v755_v26 = vsel %vm753_vm11, %v743_v49, 2102212464  ;;  %v758_v28 = vsel %vm750_vm10, %v737_v47, %v740_v48  ;;  %v762_v53 = vsel %vm750_vm10, %v740_v48, %v743_v49 }
 0x17c   : > { %v756_v31 = vsel %vm752_vm13, %v740_v48, %v755_v26  ;;  %v759_v55 = vsel %vm753_vm11, %v746_v51, 920167782  ;;  %v763_v33 = vsel %vm753_vm11, %v749_v52, 1326507024  ;;  %v1229_v61 = vsub.s32 %v1225_v22, %v1228_v42 }
 0x17d   : > { %v760_v56 = vsel %vm752_vm13, %v743_v49, %v759_v55  ;;  %v764_v57 = vsel %vm752_vm13, %v746_v51, %v763_v33  ;;  %v757_v58 = vsel %vm751_vm12, %v754_v23, %v756_v31 }
 0x17e   : > { %v761_v59 = vsel %vm751_vm12, %v758_v28, %v760_v56  ;;  %v765_v60 = vsel %vm751_vm12, %v762_v53, %v764_v57  ;;  %v1231_v4 = vsub.s32 0, %v1229_v61  ;;  %v773_v7 = vmul.u32 %v766_v39, %v757_v58 }
 0x17f   : > { %v2956_v62 = vmul.u32.u64.low %v766_v39, %v765_v60  ;;  %v2957_v63 = vmul.u32.u64.high %v766_v39, %v765_v60, %v2956_v62  ;;  %v2959_v2 = vmul.u32.u64.low %v766_v39, %v761_v59  ;;  %v2960_v5 = vmul.u32.u64.high %v766_v39, %v761_v59, %v2959_v2 }
 0x180   : > { %v2196_v10 = vmin.u32 %v1231_v4, %v1229_v61  ;;  %v1251_v58 = vsub.s32 4, %v2953_v50 }
 0x181   : > { %vm775_vm14 = vc.u32 %v2957_v63, %v2959_v2  ;;  %v776_v11 = vadd.s32 1, %v2960_v5  ;;  %v774_v44 = vadd.s32 %v2959_v2, %v2957_v63 }
 0x182   : > { %v1233_v12 = vclz %v2196_v10 }
 0x183   : > { %v777_v13 = vsel %vm775_vm14, %v776_v11, %v2960_v5 }
 0x184   : > { %v778_v14 = vadd.s32 %v777_v13, %v773_v7  ;;  %v2197_v16 = vadd.s32 4294967294, %v1233_v12 }
 0x186   : > { %v779_v17 = vadd.s32 536870912, %v778_v14  ;;  %vm2198_vm15 = vcmp.lt.s32.totalorder %v2197_v16, 0 }
 0x187   : > { %v1236_v18 = vsel %vm2198_vm15, 0, %v2197_v16 }
 0x188   : > { %v780_v20 = vshrl.u32 %v779_v17, 30  ;;  %v1237_v22 = vsub.s32 32, %v1236_v18  ;;  %v1241_v0 = vsub.s32 4294967266, %v1236_v18  ;;  %v1238_v29 = vshll.u32 %v1229_v61, %v1236_v18 }
 0x189   : > { %v1252_v61 = vsel %vm1167_vm3, %v1251_v58, %v2953_v50 }
 0x18a   : > { %v781_v24 = vshll.u32 %v780_v20, 30  ;;  %v1242_v27 = vadd.s32 127, %v1241_v0  ;;  %v1239_v30 = vshrl.u32 %v1221_v21, %v1237_v22  ;;  %v804_v42 = vsub.s32 4, %v780_v20 }
 0x18b   : > { %v1254_v2 = vsel %vm2973_vm4, 0, %v1252_v61 }
 0x18c   : > { %v782_v15 = vsub.s32 %v778_v14, %v781_v24  ;;  %v1243_v32 = vshll.u32 %v1242_v27, 23  ;;  %v1240_v37 = vor.u32 %v1239_v30, %v1238_v29  ;;  %v805_v60 = vsel %vm720_vm5, %v804_v42, %v780_v20 }
 0x18d   : > { %v807_v62 = vsel %vm719_vm6, 0, %v805_v60  ;;  %v1258_v4 = vand.u32 3, %v1254_v2  ;;  %v1361_v12 = vadd.s32 3, %v1254_v2 }
 0x18e   : > { %v784_v34 = vsub.s32 0, %v782_v15  ;;  %v1244_v38 = vor.u32 4788187, %v1243_v32  ;;  %v1247_v43 = vcvt.s32.f32 %v1240_v37  ;;  %v914_v63 = vadd.s32 3, %v807_v62 }
 0x18f   : > { %v811_v1 = vand.u32 3, %v807_v62  ;;  %vm1260_vm10 = vcmp.eq.s32.totalorder %v1258_v4, 0  ;;  %vm1263_vm15 = vcmp.eq.s32.totalorder %v1258_v4, 2  ;;  %v1362_v0 = vand.u32 3, %v1361_v12 }
 0x190   : > { %v2186_v35 = vmin.u32 %v784_v34, %v782_v15  ;;  %v1245_v41 = vand.u32 2147483647, %v1244_v38  ;;  %v915_v5 = vand.u32 3, %v914_v63 }
 0x191   : > { %vm816_vm8 = vcmp.eq.s32.totalorder %v811_v1, 2  ;;  %vm812_vm11 = vcmp.lt.s32.totalorder %v811_v1, 2  ;;  %vm813_vm12 = vcmp.eq.s32.totalorder %v811_v1, 0 }
 0x192   : > { %v786_v39 = vclz %v2186_v35  ;;  %v1248_v47 = vmul.f32 %v1247_v43, %v1245_v41  ;;  %vm920_vm9 = vcmp.eq.s32.totalorder %v915_v5, 2  ;;  %vm917_vm13 = vcmp.eq.s32.totalorder %v915_v5, 0 }
 0x193   : > { %vm916_vm14 = vcmp.lt.s32.totalorder %v915_v5, 2  ;;  %v2203_v5 = vld [vmem:[%s3182_s15] ss:$0 sm:$0xff] }
 0x194   : > { %v2187_v40 = vadd.s32 4294967294, %v786_v39  ;;  %v1249_v23 = vxor.u32 2147483648, %v1248_v47 }
 0x196   : > { %vm2188_vm0 = vcmp.lt.s32.totalorder %v2187_v40, 0  ;;  %v1250_v31 = vsel %vm1167_vm3, %v1249_v23, %v1248_v47  ;;  %vm1364_vm3 = vcmp.eq.s32.totalorder %v1362_v0, 0 }
 0x197   : > { %v789_v3 = vsel %vm2188_vm0, 0, %v2187_v40  ;;  %v1253_v56 = vsel %vm2973_vm4, %v2897_v6, %v1250_v31  ;;  %vm1259_vm0 = vcmp.lt.s32.totalorder %v1258_v4, 2  ;;  %vm1367_vm4 = vcmp.eq.s32.totalorder %v1362_v0, 2 }
 0x198   : > { %v790_v9 = vsub.s32 32, %v789_v3  ;;  %v791_v45 = vshll.u32 %v782_v15, %v789_v3  ;;  %v794_v46 = vsub.s32 4294967266, %v789_v3  ;;  %2501 = vcosq.f32 %v1253_v56 }
 0x199   : > { %2503 = vsinq.f32 %v1253_v56 }
 0x19a   : > { %v792_v48 = vshrl.u32 %v774_v44, %v790_v9  ;;  %v795_v49 = vadd.s32 127, %v794_v46 }
 0x19c   : > { %v793_v51 = vor.u32 %v792_v48, %v791_v45  ;;  %v796_v52 = vshll.u32 %v795_v49, 23 }
 0x19e   : > { %v797_v26 = vor.u32 4788187, %v796_v52  ;;  %v800_v28 = vcvt.s32.f32 %v793_v51 }
 0x1a0   : > { %v798_v53 = vand.u32 2147483647, %v797_v26 }
 0x1a2   : > { %v801_v33 = vmul.f32 %v800_v28, %v798_v53  ;;  %v2502_v7 = vpop.eup %2501 }
 0x1a3   : > { %v2504_v11 = vpop.eup %2503  ;;  %v1264_v20 = vxor.u32 2147483648, %v2502_v7 }
 0x1a4   : > { %v802_v57 = vxor.u32 2147483648, %v801_v33  ;;  %v1261_v18 = vxor.u32 2147483648, %v2504_v11 }
 0x1a5   : > { %v1265_v34 = vsel %vm1263_vm15, %v1264_v20, %v2504_v11  ;;  %v1369_v39 = vsel %vm1367_vm4, %v1264_v20, %v2504_v11 }
 0x1a6   : > { %v803_v59 = vsel %vm720_vm5, %v802_v57, %v801_v33  ;;  %v1262_v32 = vsel %vm1260_vm10, %v2502_v7, %v1261_v18  ;;  %vm1257_vm5 = vweird.f32 %v2897_v6  ;;  %v1366_v38 = vsel %vm1364_vm3, %v2502_v7, %v1261_v18 }
 0x1a7   : > { %v806_v8 = vsel %vm719_vm6, %v2914_v54, %v803_v59  ;;  %v1266_v37 = vsel %vm1259_vm0, %v1262_v32, %v1265_v34  ;;  %vm1363_vm6 = vcmp.lt.s32.totalorder %v1362_v0, 2  ;;  %vm613_vm10 = vcmask 7168  }
 0x1a8   : > { %2505 = vcosq.f32 %v806_v8  ;;  %v1267_v40 = vsel %vm1257_vm5, nan, %v1266_v37  ;;  %v1370_v41 = vsel %vm1363_vm6, %v1366_v38, %v1369_v39  ;;  %616 = vst.msk [vmem:[#allocation5] sm:$0xff] %vm613_vm10, %v2621_v25  ;;  %617 = vst.msk [vmem:[#allocation5 + $0x8] sm:$0xff] %vm613_vm10, %v2621_v25 }
 0x1a9   : > { %2507 = vsinq.f32 %v806_v8  ;;  %v1371_v43 = vsel %vm1257_vm5, nan, %v1370_v41 }
 0x1b1   : > { %v2990_v10 = vpop.f32.mrb[0].mxu0 }
 0x1b2   : > { %v2282_v13 = vpop.f32.mrb[1].mxu0  ;;  %v2506_v14 = vpop.eup %2505  ;;  %v936_v6 = vsub.f32 0.0, %v2990_v10 }
 0x1b3   : > { %v2508_v50 = vpop.eup %2507  ;;  %v817_v16 = vxor.u32 2147483648, %v2506_v14 }
 0x1b4   : > { %v814_v17 = vxor.u32 2147483648, %v2508_v50 }
 0x1b5   : > { %v818_v21 = vsel %vm816_vm8, %v817_v16, %v2508_v50  ;;  %v922_v22 = vsel %vm920_vm9, %v817_v16, %v2508_v50  ;;  %vm618_vm8 = vcmask 130048  }
 0x1b6   : > { %v815_v24 = vsel %vm813_vm12, %v2506_v14, %v814_v17  ;;  %v919_v27 = vsel %vm917_vm13, %v2506_v14, %v814_v17  ;;  %619 = vst.msk [vmem:[#allocation6] sm:$0xff] %vm618_vm8, %v2621_v25  ;;  %620 = vst.msk [vmem:[#allocation6 + $0x8] sm:$0xff] %vm618_vm8, %v2621_v25  ;;  %v2632_v14 = vmov -1e+30  }
 0x1b7   : > { %v819_v15 = vsel %vm812_vm11, %v815_v24, %v818_v21  ;;  %v923_v29 = vsel %vm916_vm14, %v919_v27, %v922_v22  ;;  %614 = vst.msk [vmem:[#allocation4] sm:$0xff] %vm613_vm10, %v2632_v14  ;;  %615 = vst.msk [vmem:[#allocation4 + $0x8] sm:$0xff] %vm613_vm10, %v2632_v14 }
 0x1b8   : > { %v820_v30 = vsel %vm810_vm7, nan, %v819_v15  ;;  %v924_v35 = vsel %vm810_vm7, nan, %v923_v29  ;;  %vm929_vm7 = vcmask 64512  }
 0x1b9   : > { %926 = vrot.lane.b32.xlu1 %v820_v30, %s2628_s13 }
 0x1bd   : > { %932 = vrot.lane.b32.xlu1 %v924_v35, %s2628_s13 }
 0x1be   : > { %v1486_v16 = vld [vmem:[#allocation4] sm:$0xff] }
 0x1c1   : > { %1373 = vrot.lane.b32.xlu1 %v1267_v40, %s2628_s13 }
 0x1c5   : > { %1379 = vrot.lane.b32.xlu1 %v1371_v43, %s2628_s13 }
 0x1c9   : > { %942 = vrot.lane.b32.xlu1 %v2990_v10, %s2628_s13 }
 0x1cd   : > { %938 = vrot.lane.b32.xlu1 %v936_v6, %s2629_s28 }
 0x22b   : > { %v927_v54 = vpop.permute.xlu1 %926 }
 0x22c   : > { %v930_v46 = vsel %vm929_vm7, %v820_v30, %v927_v54  ;;  %v1671_v54 = vld [vmem:[#allocation4 + $0x8] sm:$0xff] }
 0x22d   : > { %v946_v52 = vmul.f32 %v930_v46, %v2990_v10 }
 0x22f   : > { %v933_v44 = vpop.permute.xlu1 %932 }
 0x230   : > { %v935_v48 = vsel %vm929_vm7, %v924_v35, %v933_v44 }
 0x233   : > { %v1374_v3 = vpop.permute.xlu1 %1373 }
 0x234   : > { %v1377_v23 = vsel %vm929_vm7, %v1267_v40, %v1374_v3 }
 0x237   : > { %v1380_v9 = vpop.permute.xlu1 %1379 }
 0x238   : > { %v1382_v58 = vsel %vm929_vm7, %v1371_v43, %v1380_v9 }
 0x23b   : > { %v943_v45 = vpop.permute.xlu1 %942 }
 0x23f   : > { %v939_v47 = vpop.permute.xlu1 %938 }
 0x240   : > { %v945_v49 = vsel %vm929_vm7, %v939_v47, %v943_v45 }
 0x241   : > { %v947_v51 = vmul.f32 %v945_v49, %v935_v48  ;;  %v1510_v49 = vld [vmem:[#allocation6] sm:$0xff] }
 0x243   : > { %v948_v53 = vadd.f32 %v947_v51, %v946_v52 }
 0x245   : > { %v1069_v26 = vpop.f32.mrb[0].mxu1  ;;  %v3015_v28 = vpop.f32.mrb[2].mxu0  ;;  %949 = vst.msk [vmem:[#allocation3] sm:$0xff] %vm618_vm8, %v948_v53  ;;  %v1782_v53 = vld [vmem:[%s2819_s23] sm:$0xff] }
 0x246   : > { %v1383_v31 = vsub.f32 0.0, %v1069_v26  ;;  %v1393_v55 = vmul.f32 %v1377_v23, %v1069_v26  ;;  %v2301_v33 = vpop.f32.mrb[1].mxu1  ;;  %v2320_v42 = vpop.f32.mrb[3].mxu0 }
 0x248   : > { %1385 = vrot.lane.b32.xlu1 %v1383_v31, %s2629_s28  ;;  %v1783_v31 = vld [vmem:[%s2819_s23 + $0x8] sm:$0xff] }
 0x24c   : > { %1389 = vrot.lane.b32.xlu1 %v1069_v26, %s2628_s13 }
 0x250   : > { %1403 = vperm.xlu1 %2496, %v2867_v36   ;;  %v1406_v36 = vld [vmem:[#allocation3] sm:$0xff] }
 0x254   : > { %950 = vrot.lane.b32.xlu1 %v936_v6, %s2630_s30 }
 0x258   : > { %953 = vrot.lane.b32.xlu1 %v2990_v10, %s2629_s28 }
 0x25c   : > { %958 = vrot.lane.b32.xlu1 %v930_v46, %s2631_s12 }
 0x2ba   : > { %v1386_v56 = vpop.permute.xlu1 %1385 }
 0x2be   : > { %v1390_v57 = vpop.permute.xlu1 %1389 }
 0x2bf   : > { %v1392_v59 = vsel %vm929_vm7, %v1386_v56, %v1390_v57 }
 0x2c0   : > { %v1394_v60 = vmul.f32 %v1392_v59, %v1382_v58 }
 0x2c2   : > { %v1395_v8 = vadd.f32 %v1394_v60, %v1393_v55  ;;  %v2392_v55 = vpack.c.bf16 %v1783_v31, %v1782_v53 }
 0x2c4   : > { %2322 = vmatpush3.xpose.msk.msra.mxu1 %vm618_vm8, %v1395_v8  ;;  %2393 = vmatpush3.bf16.msra.mxu0 %v2392_v55 }
 0x2c5   : > { %2326 = vmatprep.subr.mxu1 %v2621_v25 }
 0x2c7   : > { %2324 = vmatmul.mubr.msk.f32.vlgmr.msra.gmra.mrb[2].mxu1 %vm618_vm8, %v1406_v36 }
 0x2c8   : > { %2327 = vmatpush3.msra.mxu1 %v3015_v28  ;;  %2328 = vmatprep.mubr.msk.f32.mxu1 %vm2620_vm2, %v2621_v25 }
 0x2c9   : > { %2331 = vmatprep.subr.mxu1 %v2621_v25 }
 0x2cf   : > { %v1404_v61 = vpop.permute.xlu1 %1403 }
 0x2d0   : > { %vm1405_vm9 = vcmp.gt.s32.totalorder %v2203_v5, %v1404_v61 }
 0x2d3   : > { %v951_v62 = vpop.permute.xlu1 %950 }
 0x2d7   : > { %v954_v63 = vpop.permute.xlu1 %953 }
 0x2d8   : > { %v956_v2 = vsel %vm929_vm7, %v951_v62, %v954_v63  ;;  %v1784_v62 = vld [vmem:[%s2819_s23 + $0x10] sm:$0xff]  ;;  %v1785_v63 = vld [vmem:[%s2819_s23 + $0x18] sm:$0xff] }
 0x2d9   : > { %v962_v1 = vmul.f32 %v956_v2, %v935_v48  ;;  %v2395_v2 = vpack.c.bf16 %v1785_v63, %v1784_v62 }
 0x2db   : > { %964 = vrot.lane.b32.xlu1 %v962_v1, %s2631_s12  ;;  %v959_v50 = vpop.permute.xlu1 %958  ;;  %v1688_v1 = vld [vmem:[#allocation5 + $0x8] sm:$0xff] }
 0x2dc   : > { %v961_v21 = vmul.f32 %v959_v50, %v2990_v10 }
 0x34d   : > { %v965_v20 = vpop.permute.xlu1 %964 }
 0x34e   : > { %v967_v0 = vadd.f32 %v965_v20, %v961_v21 }
 0x39a   : > { %v1480_v4 = vpop.f32.mrb[2].mxu1 }
 0x39b   : > { %v1484_v7 = vmul.f32 0.25, %v1480_v4  ;;  %v2325_v11 = vpop.f32.mrb[3].mxu1 }
 0x39d   : > { %v1485_v12 = vsel %vm1405_vm9, -1e+30, %v1484_v7 }
 0x39e   : > { %v1487_v13 = vsel %vm929_vm7, %v1485_v12, -inf }
 0x39f   : > { %1488 = vmax.xlane.f32.xlu0 %v1487_v13 }
 0x42c   : > { %v1489_v17 = vpop.xlane.xlu0 %1488 }
 0x42d   : > { %v1490_v18 = vmax.f32 %v1486_v16, %v1489_v17  ;;  %v1795_v17 = vld [vmem:[#allocation7] sm:$0xff] }
 0x42f   : > { %v1491_v22 = vsub.f32 %v1486_v16, %v1490_v18  ;;  %1592 = vst.msk [vmem:[#allocation4] sm:$0xff] %vm613_vm10, %v1490_v18  ;;  %1496 = vperm.xlu1 %2496, %v1490_v18  }
 0x431   : > { %v1492_v43 = vmul.f32 1.442695, %v1491_v22 }
 0x433   : > { %969 = vrot.lane.b32.xlu1 %v967_v0, %s2633_s22 }
 0x4ae   : > { %v1497_v24 = vpop.permute.xlu1 %1496 }
 0x4af   : > { %v1499_v27 = vsub.f32 %v1485_v12, %v1497_v24 }
 0x4b1   : > { %v1500_v15 = vmul.f32 1.442695, %v1499_v27 }
 0x4b2   : > { %v970_v29 = vpop.permute.xlu1 %969 }
 0x4b3   : > { %2509 = vpow2.f32 %v1500_v15  ;;  %973 = vst.msk [vmem:[#allocation3 + $0x8] sm:$0xff] %vm618_vm8, %v970_v29 }
 0x4b4   : > { %2511 = vpow2.f32 %v1492_v43 }
 0x4ba   : > { %v1594_v10 = vld [vmem:[#allocation3 + $0x8] sm:$0xff] }
 0x4bd   : > { %v2510_v30 = vpop.eup %2509 }
 0x4be   : > { %2329 = vmatmul.mubr.msk.f32.vlgmr.msra.gmra.mrb[4].mxu1 %vm929_vm7, %v2510_v30  ;;  %v1504_v41 = vsel %vm929_vm7, %v2510_v30, 0.0  ;;  %v2512_v6 = vpop.eup %2511 }
 0x4bf   : > { %2332 = vmatpush3.xpose.msk.msra.mxu1 %vm618_vm8, %v1395_v8  ;;  %2333 = vmatprep.mubr.msk.f32.mxu1 %vm2620_vm2, %v2621_v25 }
 0x4c0   : > { %2336 = vmatprep.subr.mxu1 %v2621_v25 }
 0x4c2   : > { %2334 = vmatmul.mubr.msk.f32.vlgmr.msra.gmra.mrb[6].mxu1 %vm618_vm8, %v1594_v10  ;;  %v1961_v10 = vld [vmem:[%s2787_s5] sm:$0xff] (%p1956_p1) }
 0x4c3   : > { %2337 = vmatpush3.msra.mxu1 %v3015_v28  ;;  %2338 = vmatprep.mubr.msk.f32.mxu1 %vm2620_vm2, %v2621_v25 }
 0x4c4   : > { %2394 = vmatprep.subr.bf16.mxu1 %v2618_v19  ;;  %v1502_v19 = vld [vmem:[#allocation5] sm:$0xff] }
 0x4c5   : > { %v1503_v45 = vmul.f32 %v2512_v6, %v1502_v19 }
 0x591   : > { %v1586_v32 = vpop.f32.mrb[4].mxu1 }
 0x592   : > { %v2330_v34 = vpop.f32.mrb[5].mxu1 }
 0x595   : > { %v1664_v35 = vpop.f32.mrb[6].mxu1 }
 0x596   : > { %v1668_v37 = vmul.f32 0.25, %v1664_v35  ;;  %v2335_v38 = vpop.f32.mrb[7].mxu1 }
 0x598   : > { %v1669_v39 = vsel %vm1405_vm9, -1e+30, %v1668_v37 }
 0x599   : > { %v1672_v40 = vsel %vm929_vm7, %v1669_v39, -inf }
 0x59a   : > { %1673 = vmax.xlane.f32.xlu1 %v1672_v40 }
 0x59e   : > { %1505 = vadd.xlane.f32.xlu1 %v1504_v41 }
 0x5af   : > { %1513 = vperm.xlu1 %2496, %v2512_v6  }
 0x627   : > { %v1674_v44 = vpop.xlane.xlu1 %1673 }
 0x628   : > { %v1675_v3 = vmax.f32 %v1671_v54, %v1674_v44 }
 0x62a   : > { %v1676_v9 = vsub.f32 %v1671_v54, %v1675_v3  ;;  %1778 = vst.msk [vmem:[#allocation4 + $0x8] sm:$0xff] %vm613_vm10, %v1675_v3  ;;  %1681 = vperm.xlu0 %2495, %v1675_v3  }
 0x62b   : > { %v1506_v46 = vpop.xlane.xlu1 %1505 }
 0x62c   : > { %v1677_v47 = vmul.f32 1.442695, %v1676_v9  ;;  %v1507_v48 = vadd.f32 %v1506_v46, %v1503_v45 }
 0x62e   : > { %2513 = vpow2.f32 %v1677_v47  ;;  %1509 = vst.msk [vmem:[#allocation5] sm:$0xff] %vm613_vm10, %v1507_v48 }
 0x62f   : > { %v1514_v51 = vpop.permute.xlu1 %1513 }
 0x630   : > { %v1516_v52 = vmul.f32 %v1514_v51, %v1510_v49 }
 0x632   : > { %v1590_v23 = vadd.f32 %v1586_v32, %v1516_v52 }
 0x634   : > { %1591 = vst.msk [vmem:[#allocation6] sm:$0xff] %vm618_vm8, %v1590_v23 }
 0x635   : > { %v1787_v26 = vld [vmem:[#allocation5] sm:$0xff] }
 0x636   : > { %2515 = vrcp.f32 %v1787_v26 }
 0x638   : > { %v2514_v28 = vpop.eup %2513 }
 0x639   : > { %1699 = vperm.xlu1 %2496, %v2514_v28   ;;  %v1689_v5 = vmul.f32 %v2514_v28, %v1688_v1 }
 0x63b   : > { %v1786_v8 = vld [vmem:[#allocation6] sm:$0xff] }
 0x640   : > { %v2516_v33 = vpop.eup %2515 }
 0x641   : > { %1791 = vperm.xlu1 %2496, %v2516_v33  }
 0x6a9   : > { %v1682_v42 = vpop.permute.xlu0 %1681 }
 0x6aa   : > { %v1684_v56 = vsub.f32 %v1669_v39, %v1682_v42 }
 0x6ac   : > { %v1685_v57 = vmul.f32 1.442695, %v1684_v56 }
 0x6ae   : > { %2517 = vpow2.f32 %v1685_v57 }
 0x6b8   : > { %v2518_v58 = vpop.eup %2517  ;;  %v1700_v60 = vpop.permute.xlu1 %1699 }
 0x6b9   : > { %2339 = vmatmul.mubr.msk.f32.vlgmr.msra.gmra.mrb[8].mxu1 %vm929_vm7, %v2518_v58  ;;  %v1690_v59 = vsel %vm929_vm7, %v2518_v58, 0.0 }
 0x6ba   : > { %1691 = vadd.xlane.f32.xlu0 %v1690_v59  ;;  %2352 = vmatprep.mubr.msk.f32.mxu1 %vm2620_vm2, %v2621_v25  ;;  %v1696_v25 = vld [vmem:[#allocation6 + $0x8] sm:$0xff] }
 0x6bb   : > { %2396 = vmatpush3.bf16.msra.mxu1 %v2395_v2  ;;  %v1702_v13 = vmul.f32 %v1700_v60, %v1696_v25 }
 0x6c0   : > { %v1792_v36 = vpop.permute.xlu1 %1791 }
 0x6c1   : > { %v1794_v61 = vmul.f32 %v1792_v36, %v1786_v8 }
 0x6c3   : > { %2346 = vmatmul.mubr.msk.f32.vlgmr.msra.gmra.mrb[4].mxu0 %vm618_vm8, %v1794_v61 }
 0x747   : > { %v1692_v4 = vpop.xlane.xlu0 %1691 }
 0x748   : > { %v1693_v7 = vadd.f32 %v1692_v4, %v1689_v5 }
 0x74a   : > { %1694 = vst.msk [vmem:[#allocation5 + $0x8] sm:$0xff] %vm613_vm10, %v1693_v7 }
 0x751   : > { %v1872_v11 = vld [vmem:[#allocation5 + $0x8] sm:$0xff] }
 0x752   : > { %2519 = vrcp.f32 %v1872_v11 }
 0x75c   : > { %v2520_v12 = vpop.eup %2519 }
 0x75d   : > { %1876 = vperm.xlu1 %2496, %v2520_v12  }
 0x78c   : > { %v1772_v14 = vpop.f32.mrb[8].mxu1 }
 0x78d   : > { %v1776_v50 = vadd.f32 %v1772_v14, %v1702_v13  ;;  %v2340_v16 = vpop.f32.mrb[9].mxu1 }
 0x78f   : > { %1777 = vst.msk [vmem:[#allocation6 + $0x8] sm:$0xff] %vm618_vm8, %v1776_v50 }
 0x796   : > { %v1865_v18 = vpop.f32.mrb[4].mxu0  ;;  %v1871_v22 = vld [vmem:[#allocation6 + $0x8] sm:$0xff] }
 0x797   : > { %v1869_v20 = vadd.f32 %v1865_v18, %v1795_v17  ;;  %v2347_v21 = vpop.f32.mrb[5].mxu0 }
 0x799   : > { %1870 = vst.msk [vmem:[#allocation7] sm:$0xff] %vm630_vm1, %v1869_v20 }
 0x7a0   : > { %v1880_v27 = vld [vmem:[#allocation7] sm:$0xff] }
 0x7dc   : > { %v1877_v0 = vpop.permute.xlu1 %1876 }
 0x7dd   : > { %v1879_v24 = vmul.f32 %v1877_v0, %v1871_v22 }
 0x7df   : > { %2353 = vmatmul.mubr.msk.f32.vlgmr.msra.gmra.mrb[10].mxu1 %vm618_vm8, %v1879_v24 }
 0x8af   : > { %1960 = sbr.rel (!%p1956_p1) target bundleno = 2240 (0x8c0), region = 76 }
 0x8b2   : > { %v1950_v15 = vpop.f32.mrb[10].mxu1 }
 0x8b3   : > { %v1954_v29 = vadd.f32 %v1950_v15, %v1880_v27  ;;  %v2354_v30 = vpop.f32.mrb[11].mxu1 }
 0x8b5   : > { %1955 = vst.msk [vmem:[#allocation7] sm:$0xff] %vm630_vm1, %v1954_v29 }
 0x8bc   : > { %v1962_v32 = vld [vmem:[#allocation7] sm:$0xff] }
 0x8bd   : > { %v1963_v34 = vadd.f32 %v1962_v32, %v1961_v10 }
 0x8bf   : > { %1964 = vst.msk [vmem:[%s528_s27] sm:$0xff] %vm630_vm1, %v1963_v34 }
 0x8c0 PF: > { %s3183_s26 = sld [smem:[#allocation12_spill]]  ;;  %s2214_s20 = sshll.u32 %s2603_s17, 7 }
 0x8c1   : > { %s3185_s10 = sld [smem:[#allocation24_spill]]  ;;  %s1980_s25 = sshll.u32 %s528_s27, 4  ;;  %s1981_s25 = int_to_ptr.vmem [resolvable:$true] %s1980_s25 }
 0x8c2   : > { %s2521_s11 = scalar_lea.vmem %s1981_s25, 128  ;;  %s2634_s24 = smov [#allocation8]  }
 0x8c3   : > { %p2522_p2 = scmp.ne.s32.totalorder %s1981_s25, %s2521_s11  ;;  %s2525_s13 = sshll.u32 %s2634_s24, 4  ;;  %s2526_s13 = int_to_ptr.vmem [resolvable:$false] %s2525_s13 }
 0x8c4   : > { %s2527_s28 = scalar_lea.vmem %s2526_s13, 256  ;;  %p2528_p6 = scmp.lt.s32.totalorder %s1981_s25, %s2526_s13 }
 0x8c5   : > { %p2523_p4 = pnand %p2522_p2, %p2739_p3  ;;  %p2529_p7 = scmp.lt.s32.totalorder %s2527_s28, %s2521_s11 }
 0x8c6   : > { %s3186_s5 = sand.u32 1, %s3183_s26  }
 0x8c7   : > { %s3086_s14 = scalar_lea.hbm %s3185_s10, %s2214_s20  ;;  %s1966_s29 = scalar_lea.sflag [#allocation9], %s3186_s5 }
 0x8c8   : > { %p2524_p5 = pneg %p2523_p4  ;;  %p2530_p8 = por %p2529_p7, %p2528_p6 }
 0x8ca   : > { %p2531_p10 = pnand %p2530_p8, %p2524_p5 }
 0x8cc   : > { %2534 = shalt.err (!%p2531_p10)
}
 0x8cd   : > { %s2535_s17 = scalar_lea.hbm %s3086_s14, 128  ;;  %s2539_s30 = scalar_lea.hbm %s3185_s10, 256 }
 0x8ce   : > { %p2536_p11 = scmp.ne.s32.totalorder %s3086_s14, %s2535_s17  ;;  %p2540_p0 = scmp.lt.u32.totalorder %s3086_s14, %s3185_s10 }
 0x8cf   : > { %p2541_p1 = scmp.lt.u32.totalorder %s2539_s30, %s2535_s17  ;;  %p2543_p4 = scmp.lt.u32.totalorder %s2535_s17, %s3086_s14 }
 0x8d0   : > { %p2537_p12 = pnand %p2536_p11, %p2739_p3 }
 0x8d1   : > { %p2542_p2 = por %p2541_p1, %p2540_p0 }
 0x8d2   : > { %p2538_p13 = pneg %p2537_p12 }
 0x8d3   : > { %p2544_p5 = por %p2543_p4, %p2542_p2 }
 0x8d5   : > { %p2545_p6 = pnand %p2544_p5, %p2538_p13 }
 0x8d7   : > { %2548 = shalt.err (!%p2545_p6)
}
 0x8d8   : > { %2405 = dma.vmem_to_hbm [thread:$0]  (%p2739_p3), %s1981_s25, 128, %s3086_s14, %s1966_s29  }
 0x8d9 PF: > { %s3187_s19 = sld [smem:[#allocation16_spill]]  ;;  %s3188_s15 = sld [smem:[#allocation11_spill]] }
 0x8df   : > { %p2411_p7 = scmp.ge.s32.totalorder %s3187_s19, 2  ;;  %s1992_s26 = sand.u32 1, %s3188_s15  }
 0x8e0   : > { %s1993_s20 = scalar_lea.sflag [#allocation9], %s1992_s26 }
 0x8e1   : > { %p2408_p8 = pnand %p2411_p7, %p2749_p9 }
 0x8e3   : > { %2582 = dma.done.wait (!%p2408_p8), %s1993_s20, 128  }
 0x8e4   : > { %2584 = vsyncadd (!%p2408_p8), %s1993_s20, 4294967168  ;;  %s23_s20 = sadd.s32 1, %s3187_s19   ;;  %s3190_s13 = sld [smem:[#allocation12_spill]] }
 0x8e5   : > { %p20_p10 = scmp.ge.s32.totalorder %s23_s20, 6   ;;  %s3191_s14 = sld [smem:[#allocation13_spill]] }
 0x8e6   : > { %s3192_s15 = sld [smem:[#allocation21_spill]]  ;;  %s3193_s16 = sld [smem:[#allocation14_spill]] }
 0x8e7   : > { %s3194_s17 = sld [smem:[#allocation15_spill]]  ;;  %s3195_s18 = sld [smem:[#allocation17_spill]] }
 0x8e8   : > { %s3196_s19 = sld [smem:[#allocation19_spill]]  ;;  %22 = sbr.rel (!%p20_p10) target bundleno = 9 (0x9), region = 140 }
 0x8ef   :  { %1998 = vsyncpa [#allocation9], 1 }
 0x8f0   :  { %2000 = vsyncpa [#allocation9 + $0x1], 1 }

</bundles_post_ra>
